<compile_context>
chip_gen: v7x
topology: tpu7x:2x2x1
jax: 0.10.0
libtpu: 0.0.40
codegen_flags: <defaults>
</compile_context>

<pallas_src>
import functools

import jax
import jax.numpy as jnp
from jax.experimental import pallas as pl
from jax.experimental.pallas import tpu as pltpu


def _round_up(v, m):
    return -(-v // m) * m


# ----------------------------------------------------------------------------
# One-time, cached hardware / capability queries (no per-call sync or compile)
# ----------------------------------------------------------------------------
@functools.lru_cache(maxsize=None)
def _vmem_capacity_bytes():
    """Generation-aware VMEM capacity (v5e/v6e: 128 MiB, v7x: 64 MiB/TC)."""
    try:
        info = pltpu.get_tpu_info()
        cap = int(getattr(info, "vmem_capacity_bytes", 0) or 0)
        if cap > 0:
            return cap
    except Exception:
        pass
    return 64 << 20  # conservative fallback = v7x per-TensorCore VMEM


@functools.lru_cache(maxsize=None)
def _single_buffer_weights_supported():
    """One-time AOT probe: does this jax/Mosaic build accept pl.Buffered(1)?"""
    try:
        spec = pl.BlockSpec((8, 128), lambda i: (0, 0),
                            pipeline_mode=pl.Buffered(1))

        def _k(w_ref, o_ref):
            o_ref[...] = w_ref[...] + 1.0

        fn = pl.pallas_call(
            _k,
            out_shape=jax.ShapeDtypeStruct((8, 128), jnp.float32),
            grid=(2,),
            in_specs=[spec],
            out_specs=pl.BlockSpec((8, 128), lambda i: (0, 0)),
        )
        jax.jit(fn).lower(jnp.zeros((8, 128), jnp.float32)).compile()
        return True
    except Exception:
        return False


# ----------------------------------------------------------------------------
# Kernel
# ----------------------------------------------------------------------------
def _make_kernel(n_blocks, n_lin_z, beta, use_z):
    """ResnetFC forward body for one row tile; block chain unrolled at trace time."""
    fold_beta = beta > 0

    def act(v):
        if fold_beta:
            # softplus(beta*v); the trailing 1/beta is folded into the consumer
            # weights (fc0_w, fc1_w, w_out) in the wrapper.  Stable form:
            # max(t,0) + log(1 + exp(-|t|)).
            t = beta * v
            return jnp.maximum(t, 0.0) + jnp.log(1.0 + jnp.exp(-jnp.abs(t)))
        return jnp.maximum(v, 0.0)

    def body(x_ref, z_ref, win_ref, bin_ref, wz_ref, bz_ref,
             fc0w_ref, fc0b_ref, fc1w_ref, fc1b_ref,
             wout_ref, bout_ref, out_ref):
        wdt = win_ref.dtype  # matmul dtype (default bf16); accumulation is f32
        # lin_in: (tm, d_in) @ (d_in, Hp)
        h = jnp.dot(x_ref[...].astype(wdt), win_ref[...],
                    preferred_element_type=jnp.float32) + bin_ref[...]
        if use_z:
            z_lhs = z_ref[...].astype(wdt)
        for blk in range(n_blocks):
            if use_z and blk < n_lin_z:
                # Per-block z projection (no fused tz_all buffer: avoids a
                # (tm, n_lin_z*Hp) f32 live range across the unrolled loop).
                h = h + (jnp.dot(z_lhs, wz_ref[blk],
                                 preferred_element_type=jnp.float32)
                         + bz_ref[blk])
            # ResnetBlockFC: net = fc_0(act(h)); dx = fc_1(act(net)); h += dx
            net = jnp.dot(act(h).astype(wdt), fc0w_ref[blk],
                          preferred_element_type=jnp.float32) + fc0b_ref[blk]
            dx = jnp.dot(act(net).astype(wdt), fc1w_ref[blk],
                         preferred_element_type=jnp.float32) + fc1b_ref[blk]
            h = h + dx
        out = jnp.dot(act(h).astype(wdt), wout_ref[...],
                      preferred_element_type=jnp.float32) + bout_ref[...]
        out_ref[...] = out.astype(out_ref.dtype)

    if use_z:
        def kernel(x_ref, z_ref, win_ref, bin_ref, wz_ref, bz_ref,
                   fc0w_ref, fc0b_ref, fc1w_ref, fc1b_ref,
                   wout_ref, bout_ref, out_ref):
            body(x_ref, z_ref, win_ref, bin_ref, wz_ref, bz_ref,
                 fc0w_ref, fc0b_ref, fc1w_ref, fc1b_ref,
                 wout_ref, bout_ref, out_ref)
    else:
        def kernel(x_ref, win_ref, bin_ref,
                   fc0w_ref, fc0b_ref, fc1w_ref, fc1b_ref,
                   wout_ref, bout_ref, out_ref):
            body(x_ref, None, win_ref, bin_ref, None, None,
                 fc0w_ref, fc0b_ref, fc1w_ref, fc1b_ref,
                 wout_ref, bout_ref, out_ref)

    return kernel


# ----------------------------------------------------------------------------
# Wrapper
# ----------------------------------------------------------------------------
def resnet_fc_forward(zx, params, *, d_in, d_out, d_hidden, n_blocks, d_latent,
                      combine_layer=1000, beta=0.0, tile_m=512,
                      weight_dtype=jnp.bfloat16, single_buffer_weights=True):
    """Pallas ResnetFC forward.  zx: (..., d_latent + d_in) -> (..., d_out)."""
    # TODO(synk): d_in == 0 branch (x = zeros(d_hidden)) and the use_spade
    # scaling path are not implemented; combine_inner_dims / combine_index have
    # no effect in the provided forward, so there is nothing to implement.
    assert d_in > 0
    feat = zx.shape[-1]
    assert feat == d_latent + d_in
    lead = zx.shape[:-1]

    n_lin_z = min(combine_layer, n_blocks) if d_latent > 0 else 0
    use_z = n_lin_z > 0
    hp = _round_up(d_hidden, 128)  # lane-dense hidden dim (MXU / aligned tiles)
    # TODO(synk): on v6e/v7x (2x256^2 MXU) benchmark rounding hp to 256 when
    # hp % 256 == 128 (e.g. d_hidden = 384).

    wdt = jnp.dtype(weight_dtype) if weight_dtype is not None else jnp.float32
    # TODO(synk): optional fp8 weight quantization (per-matrix scale) for v7x.

    def padw(w, rows, cols):
        w = jnp.asarray(w, jnp.float32)
        pads = [(0, 0)] * (w.ndim - 2) + [(0, rows - w.shape[-2]),
                                          (0, cols - w.shape[-1])]
        return jnp.pad(w, pads)

    # Zero-padding is exact: padded weight rows/cols are zero, so padded hidden
    # columns never reach real outputs, for both ReLU and softplus.
    # NOTE: any future cross-column op (layernorm/softmax) breaks this invariant.
    inv_beta = (1.0 / beta) if beta > 0 else 1.0  # folded into act consumers
    w_in = padw(params["w_in"], d_in, hp).astype(wdt)
    b_in = padw(params["b_in"], 1, hp)                        # biases stay f32
    fc0w = (padw(params["fc0_w"], hp, hp) * inv_beta).astype(wdt)
    fc0b = padw(params["fc0_b"], 1, hp)
    fc1w = (padw(params["fc1_w"], hp, hp) * inv_beta).astype(wdt)
    fc1b = padw(params["fc1_b"], 1, hp)
    w_out = (padw(params["w_out"], hp, d_out) * inv_beta).astype(wdt)
    b_out = padw(params["b_out"], 1, d_out)

    weight_args = [w_in, b_in]
    if use_z:
        wz = padw(params["w_z"], d_latent, hp).astype(wdt)    # (n_lin_z, d_lat, Hp)
        bz = padw(params["b_z"], 1, hp)                       # (n_lin_z, 1, Hp)
        weight_args += [wz, bz]
    weight_args += [fc0w, fc0b, fc1w, fc1b, w_out, b_out]

    # Split z / x in the wrapper so the kernel never lane-slices zx.
    # TODO(synk): for tiny-hidden configs, benchmark a single (tm, feat) input
    # tile vs. the two narrow x/z tiles (lane-sparse DMA rows).
    zx2 = zx.reshape(-1, feat)
    n = zx2.shape[0]
    if d_latent > 0:
        z2 = zx2[:, :d_latent]
        x2 = zx2[:, d_latent:]
    else:
        z2, x2 = None, zx2

    # ---- row-tile selection -------------------------------------------------
    n8 = _round_up(max(n, 1), 8)
    tm = max(8, min(_round_up(tile_m, 8), n8))
    # Aim for >= 8 grid steps (>= 4 per TensorCore on v7x's 2 TCs) when there
    # are enough rows, so the "parallel" axis shards evenly across cores and
    # the x/z/out DMAs pipeline under the long matmul chain.
    target_steps = 8
    if n8 >= target_steps * 8:
        tm = min(tm, _round_up(-(-n8 // target_steps), 8))
    elif n8 >= 16 and -(-n // tm) < 2:
        tm = _round_up(n8 // 2, 8)
    # TODO(synk): verify the parallel axis actually shards across both v7x TCs;
    # otherwise add a leading CORE_PARALLEL axis.

    use_single_buffer = bool(single_buffer_weights) and _single_buffer_weights_supported()

    def _is_matrix(a):
        # Single-buffer only the weight matrices; biases are tiny and stay
        # default double-buffered.
        return a.ndim >= 2 and a.shape[-2] > 1

    def _resident_bytes(a):
        b = int(a.size) * a.dtype.itemsize
        return b if (use_single_buffer and _is_matrix(a)) else 2 * b

    wbytes_resident = sum(_resident_bytes(a) for a in weight_args)

    def _act_bytes(t):
        io = 2 * t * feat * zx2.dtype.itemsize + 2 * t * d_out * 4
        tmp = 6 * t * hp * 4  # h / net / dx / activation temporaries
        return io + tmp

    # Generation-aware VMEM budget: shrink the row tile if resident weights +
    # per-tile activations exceed it (leaves headroom for compiler scratch).
    vmem_cap = _vmem_capacity_bytes()
    budget = int(0.70 * vmem_cap)
    # TODO(synk): if resident weights alone exceed the budget (huge d_hidden /
    # many blocks on v7x), stream fc0/fc1/wz over a second "arbitrary" grid
    # axis with h carried in VMEM scratch instead of shrinking tm further.
    while tm > 64 and wbytes_resident + _act_bytes(tm) > budget:
        tm = max(64, _round_up(tm // 2, 8))

    grid = (pl.cdiv(n, tm),)
    # Ragged last tile is handled by Pallas (OOB rows are dropped on store);
    # all ops are row-independent, so garbage OOB rows cannot leak.

    kernel = _make_kernel(n_blocks, n_lin_z, beta, use_z)

    def w_spec(a):
        shape = tuple(a.shape)
        idx = lambda i, _nd=len(shape): (0,) * _nd
        if use_single_buffer and _is_matrix(a):
            # Constant-index weights: one resident VMEM buffer is enough.
            return pl.BlockSpec(shape, idx, pipeline_mode=pl.Buffered(1))
        return pl.BlockSpec(shape, idx)

    args = [x2]
    in_specs = [pl.BlockSpec((tm, d_in), lambda i: (i, 0))]
    if use_z:
        args.append(z2)
        in_specs.append(pl.BlockSpec((tm, d_latent), lambda i: (i, 0)))
    args += weight_args
    in_specs += [w_spec(a) for a in weight_args]

    est = wbytes_resident + _act_bytes(tm)
    vmem_limit = int(min(int(0.85 * vmem_cap), max(2 * est, 32 << 20)))

    out = pl.pallas_call(
        kernel,
        out_shape=jax.ShapeDtypeStruct((n, d_out), zx.dtype),
        grid_spec=pltpu.PrefetchScalarGridSpec(
            num_scalar_prefetch=0,
            grid=grid,
            in_specs=in_specs,
            # Direct (tm, d_out) store: last dim equals the full array dim
            # (legal masked store) and avoids writing a 128-padded output plus
            # a second HBM slice pass in the wrapper.
            out_specs=pl.BlockSpec((tm, d_out), lambda i: (i, 0)),
        ),
        compiler_params=pltpu.CompilerParams(
            dimension_semantics=("parallel",),
            vmem_limit_bytes=vmem_limit),
    )(*args)

    return out.reshape(*lead, d_out)


# ----------------------------------------------------------------------------
# Deterministic parameter init (shapes from ResnetFC.__init__, pre-transposed)
# ----------------------------------------------------------------------------
def init_params(key, *, d_in, d_out, d_hidden, n_blocks, d_latent,
                combine_layer=1000):
    ks = jax.random.split(key, 6)

    def kaiming(k, fan_in, shape):  # kaiming_normal_(a=0, mode='fan_in')
        return jax.random.normal(k, shape, jnp.float32) * jnp.sqrt(2.0 / fan_in)

    n_lin_z = min(combine_layer, n_blocks) if d_latent > 0 else 0
    p = {}
    p["w_in"] = kaiming(ks[0], d_in, (d_in, d_hidden))
    p["b_in"] = jnp.zeros((1, d_hidden), jnp.float32)
    p["fc0_w"] = kaiming(ks[1], d_hidden, (n_blocks, d_hidden, d_hidden))
    p["fc0_b"] = jnp.zeros((n_blocks, 1, d_hidden), jnp.float32)
    # NOTE: PyTorch inits fc_1 weights to exactly zero; use small random values
    # here so the residual branch of the kernel is exercised numerically.
    p["fc1_w"] = 0.01 * jax.random.normal(
        ks[2], (n_blocks, d_hidden, d_hidden), jnp.float32)
    p["fc1_b"] = jnp.zeros((n_blocks, 1, d_hidden), jnp.float32)
    if n_lin_z > 0:
        p["w_z"] = kaiming(ks[3], d_latent, (n_lin_z, d_latent, d_hidden))
        p["b_z"] = jnp.zeros((n_lin_z, 1, d_hidden), jnp.float32)
    p["w_out"] = kaiming(ks[4], d_hidden, (d_hidden, d_out))
    p["b_out"] = jnp.zeros((1, d_out), jnp.float32)
    return p


# ----------------------------------------------------------------------------
# Pure-JAX reference (same semantics as the PyTorch forward; matmul_dtype lets
# the reference use the same bf16 MXU rounding as the kernel default)
# ----------------------------------------------------------------------------
def resnet_fc_ref(zx, p, *, d_latent, n_blocks, combine_layer=1000, beta=0.0,
                  matmul_dtype=jnp.float32):
    mdt = jnp.dtype(matmul_dtype)

    def mm(a, w):
        return jnp.dot(a.astype(mdt), jnp.asarray(w).astype(mdt),
                       preferred_element_type=jnp.float32)

    def act(x):
        if beta > 0:
            return jax.nn.softplus(beta * x) / beta
        return jnp.maximum(x, 0.0)

    if d_latent > 0:
        z = zx[..., :d_latent]
        x = zx[..., d_latent:]
    else:
        x = zx
    x = mm(x, p["w_in"]) + p["b_in"]
    for i in range(n_blocks):
        if d_latent > 0 and i < combine_layer:
            x = x + (mm(z, p["w_z"][i]) + p["b_z"][i])
        net = mm(act(x), p["fc0_w"][i]) + p["fc0_b"][i]
        dx = mm(act(net), p["fc1_w"][i]) + p["fc1_b"][i]
        x = x + dx
    return mm(act(x), p["w_out"]) + p["b_out"]


# ----------------------------------------------------------------------------
if __name__ == "__main__":
    key = jax.random.PRNGKey(0)
    k1, k2, k3, k4 = jax.random.split(key, 4)

    # Case 1: ReLU (beta = 0), with latent z (exercises the lin_z path).
    d_in, d_out, d_hidden, n_blocks, d_latent = 24, 4, 32, 5, 8
    p1 = init_params(k1, d_in=d_in, d_out=d_out, d_hidden=d_hidden,
                     n_blocks=n_blocks, d_latent=d_latent)
    zx1 = jax.random.normal(k2, (2, 32, d_latent + d_in), jnp.float32)
    out1 = resnet_fc_forward(zx1, p1, d_in=d_in, d_out=d_out,
                             d_hidden=d_hidden, n_blocks=n_blocks,
                             d_latent=d_latent, beta=0.0)
    out1 = jax.block_until_ready(out1)
    ref1 = resnet_fc_ref(zx1.reshape(-1, d_latent + d_in), p1,
                         d_latent=d_latent, n_blocks=n_blocks, beta=0.0,
                         matmul_dtype=jnp.bfloat16).reshape(2, 32, d_out)
    assert out1.shape == (2, 32, d_out), out1.shape
    err1 = float(jnp.max(jnp.abs(out1 - ref1)))
    assert jnp.allclose(out1, ref1, atol=5e-2, rtol=5e-2), err1

    # Case 2: Softplus (beta = 100), no latent (exercises the no-z kernel
    # variant and the folded-beta softplus activation).
    d_in2, n_blocks2 = 24, 3
    p2 = init_params(k3, d_in=d_in2, d_out=d_out, d_hidden=d_hidden,
                     n_blocks=n_blocks2, d_latent=0)
    zx2 = jax.random.normal(k4, (2, 32, d_in2), jnp.float32)
    out2 = resnet_fc_forward(zx2, p2, d_in=d_in2, d_out=d_out,
                             d_hidden=d_hidden, n_blocks=n_blocks2,
                             d_latent=0, beta=100.0)
    out2 = jax.block_until_ready(out2)
    ref2 = resnet_fc_ref(zx2.reshape(-1, d_in2), p2,
                         d_latent=0, n_blocks=n_blocks2, beta=100.0,
                         matmul_dtype=jnp.bfloat16).reshape(2, 32, d_out)
    assert out2.shape == (2, 32, d_out), out2.shape
    err2 = float(jnp.max(jnp.abs(out2 - ref2)))
    assert jnp.allclose(out2, ref2, atol=5e-2, rtol=5e-2), err2

    print("KERNEL_OK")
</pallas_src>

<mosaic_0001>
module attributes {stable_mosaic.version = 11 : i64} {
  func.func @kernel(%arg0: i32, %arg1: memref<8x24xf32, #tpu.memory_space<vmem>>, %arg2: memref<8x8xf32, #tpu.memory_space<vmem>>, %arg3: memref<24x128xbf16, #tpu.memory_space<vmem>>, %arg4: memref<1x128xf32, #tpu.memory_space<vmem>>, %arg5: memref<5x8x128xbf16, #tpu.memory_space<vmem>>, %arg6: memref<5x1x128xf32, #tpu.memory_space<vmem>>, %arg7: memref<5x128x128xbf16, #tpu.memory_space<vmem>>, %arg8: memref<5x1x128xf32, #tpu.memory_space<vmem>>, %arg9: memref<5x128x128xbf16, #tpu.memory_space<vmem>>, %arg10: memref<5x1x128xf32, #tpu.memory_space<vmem>>, %arg11: memref<128x4xbf16, #tpu.memory_space<vmem>>, %arg12: memref<1x4xf32, #tpu.memory_space<vmem>>, %arg13: memref<8x4xf32, #tpu.memory_space<vmem>>) attributes {dimension_semantics = [#tpu.dimension_semantics<parallel>], iteration_bounds = array<i64: 8>, scalar_prefetch = 0 : i64, scratch_operands = 0 : i64, tpu.core_type = #tpu.core_type<tc>, window_params = [{transform_indices = @transform_0, window_bounds = array<i64: 8, 24>}, {transform_indices = @transform_1, window_bounds = array<i64: 8, 8>}, {pipeline_mode = #tpu.pipeline_mode<synchronous>, transform_indices = @transform_2, window_bounds = array<i64: 24, 128>}, {pipeline_mode = #tpu.pipeline_mode<synchronous>, transform_indices = @transform_3, window_bounds = array<i64: 1, 128>}, {pipeline_mode = #tpu.pipeline_mode<synchronous>, transform_indices = @transform_4, window_bounds = array<i64: 5, 8, 128>}, {pipeline_mode = #tpu.pipeline_mode<synchronous>, transform_indices = @transform_5, window_bounds = array<i64: 5, 1, 128>}, {pipeline_mode = #tpu.pipeline_mode<synchronous>, transform_indices = @transform_6, window_bounds = array<i64: 5, 128, 128>}, {pipeline_mode = #tpu.pipeline_mode<synchronous>, transform_indices = @transform_7, window_bounds = array<i64: 5, 1, 128>}, {pipeline_mode = #tpu.pipeline_mode<synchronous>, transform_indices = @transform_8, window_bounds = array<i64: 5, 128, 128>}, {pipeline_mode = #tpu.pipeline_mode<synchronous>, transform_indices = @transform_9, window_bounds = array<i64: 5, 1, 128>}, {pipeline_mode = #tpu.pipeline_mode<synchronous>, transform_indices = @transform_10, window_bounds = array<i64: 128, 4>}, {pipeline_mode = #tpu.pipeline_mode<synchronous>, transform_indices = @transform_11, window_bounds = array<i64: 1, 4>}, {transform_indices = @transform_12, window_bounds = array<i64: 8, 4>}]} {
    %c0 = arith.constant 0 : index
    %c0_0 = arith.constant 0 : index
    %0 = vector.load %arg1[%c0, %c0_0] : memref<8x24xf32, #tpu.memory_space<vmem>>, vector<8x24xf32>
    %1 = arith.truncf %0 : vector<8x24xf32> to vector<8x24xbf16>
    %c0_1 = arith.constant 0 : index
    %c0_2 = arith.constant 0 : index
    %2 = vector.load %arg3[%c0_1, %c0_2] : memref<24x128xbf16, #tpu.memory_space<vmem>>, vector<24x128xbf16>
    %cst = arith.constant dense<0.000000e+00> : vector<8x128xf32>
    %3 = tpu.matmul %1, %2, %cst {dimension_numbers = #tpu.dot_dimension_numbers<[1], [0], [0], [1], [0, 0, 1, 1], [], []>} : vector<8x24xbf16>, vector<24x128xbf16>, vector<8x128xf32> -> vector<8x128xf32>
    %c0_3 = arith.constant 0 : index
    %c0_4 = arith.constant 0 : index
    %4 = vector.load %arg4[%c0_3, %c0_4] : memref<1x128xf32, #tpu.memory_space<vmem>>, vector<1x128xf32>
    %5 = vector.broadcast %4 : vector<1x128xf32> to vector<8x128xf32>
    %6 = arith.addf %3, %5 : vector<8x128xf32>
    %c0_5 = arith.constant 0 : index
    %c0_6 = arith.constant 0 : index
    %7 = vector.load %arg2[%c0_5, %c0_6] : memref<8x8xf32, #tpu.memory_space<vmem>>, vector<8x8xf32>
    %8 = arith.truncf %7 : vector<8x8xf32> to vector<8x8xbf16>
    %c0_7 = arith.constant 0 : index
    %c0_8 = arith.constant 0 : index
    %c0_9 = arith.constant 0 : index
    %9 = vector.load %arg5[%c0_7, %c0_8, %c0_9] : memref<5x8x128xbf16, #tpu.memory_space<vmem>>, vector<1x8x128xbf16>
    %10 = vector.shape_cast %9 : vector<1x8x128xbf16> to vector<8x128xbf16>
    %cst_10 = arith.constant dense<0.000000e+00> : vector<8x128xf32>
    %11 = tpu.matmul %8, %10, %cst_10 {dimension_numbers = #tpu.dot_dimension_numbers<[1], [0], [0], [1], [0, 0, 1, 1], [], []>} : vector<8x8xbf16>, vector<8x128xbf16>, vector<8x128xf32> -> vector<8x128xf32>
    %c0_11 = arith.constant 0 : index
    %c0_12 = arith.constant 0 : index
    %c0_13 = arith.constant 0 : index
    %12 = vector.load %arg6[%c0_11, %c0_12, %c0_13] : memref<5x1x128xf32, #tpu.memory_space<vmem>>, vector<1x1x128xf32>
    %13 = vector.shape_cast %12 : vector<1x1x128xf32> to vector<1x128xf32>
    %14 = vector.broadcast %13 : vector<1x128xf32> to vector<8x128xf32>
    %15 = arith.addf %11, %14 : vector<8x128xf32>
    %16 = arith.addf %6, %15 : vector<8x128xf32>
    %cst_14 = arith.constant 0.000000e+00 : f32
    %17 = vector.broadcast %cst_14 : f32 to vector<8x128xf32>
    %18 = arith.maximumf %16, %17 : vector<8x128xf32>
    %19 = arith.truncf %18 : vector<8x128xf32> to vector<8x128xbf16>
    %c0_15 = arith.constant 0 : index
    %c0_16 = arith.constant 0 : index
    %c0_17 = arith.constant 0 : index
    %20 = vector.load %arg7[%c0_15, %c0_16, %c0_17] : memref<5x128x128xbf16, #tpu.memory_space<vmem>>, vector<1x128x128xbf16>
    %21 = vector.shape_cast %20 : vector<1x128x128xbf16> to vector<128x128xbf16>
    %cst_18 = arith.constant dense<0.000000e+00> : vector<8x128xf32>
    %22 = tpu.matmul %19, %21, %cst_18 {dimension_numbers = #tpu.dot_dimension_numbers<[1], [0], [0], [1], [0, 0, 1, 1], [], []>} : vector<8x128xbf16>, vector<128x128xbf16>, vector<8x128xf32> -> vector<8x128xf32>
    %c0_19 = arith.constant 0 : index
    %c0_20 = arith.constant 0 : index
    %c0_21 = arith.constant 0 : index
    %23 = vector.load %arg8[%c0_19, %c0_20, %c0_21] : memref<5x1x128xf32, #tpu.memory_space<vmem>>, vector<1x1x128xf32>
    %24 = vector.shape_cast %23 : vector<1x1x128xf32> to vector<1x128xf32>
    %25 = vector.broadcast %24 : vector<1x128xf32> to vector<8x128xf32>
    %26 = arith.addf %22, %25 : vector<8x128xf32>
    %cst_22 = arith.constant 0.000000e+00 : f32
    %27 = vector.broadcast %cst_22 : f32 to vector<8x128xf32>
    %28 = arith.maximumf %26, %27 : vector<8x128xf32>
    %29 = arith.truncf %28 : vector<8x128xf32> to vector<8x128xbf16>
    %c0_23 = arith.constant 0 : index
    %c0_24 = arith.constant 0 : index
    %c0_25 = arith.constant 0 : index
    %30 = vector.load %arg9[%c0_23, %c0_24, %c0_25] : memref<5x128x128xbf16, #tpu.memory_space<vmem>>, vector<1x128x128xbf16>
    %31 = vector.shape_cast %30 : vector<1x128x128xbf16> to vector<128x128xbf16>
    %cst_26 = arith.constant dense<0.000000e+00> : vector<8x128xf32>
    %32 = tpu.matmul %29, %31, %cst_26 {dimension_numbers = #tpu.dot_dimension_numbers<[1], [0], [0], [1], [0, 0, 1, 1], [], []>} : vector<8x128xbf16>, vector<128x128xbf16>, vector<8x128xf32> -> vector<8x128xf32>
    %c0_27 = arith.constant 0 : index
    %c0_28 = arith.constant 0 : index
    %c0_29 = arith.constant 0 : index
    %33 = vector.load %arg10[%c0_27, %c0_28, %c0_29] : memref<5x1x128xf32, #tpu.memory_space<vmem>>, vector<1x1x128xf32>
    %34 = vector.shape_cast %33 : vector<1x1x128xf32> to vector<1x128xf32>
    %35 = vector.broadcast %34 : vector<1x128xf32> to vector<8x128xf32>
    %36 = arith.addf %32, %35 : vector<8x128xf32>
    %37 = arith.addf %16, %36 : vector<8x128xf32>
    %c1 = arith.constant 1 : index
    %c0_30 = arith.constant 0 : index
    %c0_31 = arith.constant 0 : index
    %38 = vector.load %arg5[%c1, %c0_30, %c0_31] : memref<5x8x128xbf16, #tpu.memory_space<vmem>>, vector<1x8x128xbf16>
    %39 = vector.shape_cast %38 : vector<1x8x128xbf16> to vector<8x128xbf16>
    %cst_32 = arith.constant dense<0.000000e+00> : vector<8x128xf32>
    %40 = tpu.matmul %8, %39, %cst_32 {dimension_numbers = #tpu.dot_dimension_numbers<[1], [0], [0], [1], [0, 0, 1, 1], [], []>} : vector<8x8xbf16>, vector<8x128xbf16>, vector<8x128xf32> -> vector<8x128xf32>
    %c1_33 = arith.constant 1 : index
    %c0_34 = arith.constant 0 : index
    %c0_35 = arith.constant 0 : index
    %41 = vector.load %arg6[%c1_33, %c0_34, %c0_35] : memref<5x1x128xf32, #tpu.memory_space<vmem>>, vector<1x1x128xf32>
    %42 = vector.shape_cast %41 : vector<1x1x128xf32> to vector<1x128xf32>
    %43 = vector.broadcast %42 : vector<1x128xf32> to vector<8x128xf32>
    %44 = arith.addf %40, %43 : vector<8x128xf32>
    %45 = arith.addf %37, %44 : vector<8x128xf32>
    %cst_36 = arith.constant 0.000000e+00 : f32
    %46 = vector.broadcast %cst_36 : f32 to vector<8x128xf32>
    %47 = arith.maximumf %45, %46 : vector<8x128xf32>
    %48 = arith.truncf %47 : vector<8x128xf32> to vector<8x128xbf16>
    %c1_37 = arith.constant 1 : index
    %c0_38 = arith.constant 0 : index
    %c0_39 = arith.constant 0 : index
    %49 = vector.load %arg7[%c1_37, %c0_38, %c0_39] : memref<5x128x128xbf16, #tpu.memory_space<vmem>>, vector<1x128x128xbf16>
    %50 = vector.shape_cast %49 : vector<1x128x128xbf16> to vector<128x128xbf16>
    %cst_40 = arith.constant dense<0.000000e+00> : vector<8x128xf32>
    %51 = tpu.matmul %48, %50, %cst_40 {dimension_numbers = #tpu.dot_dimension_numbers<[1], [0], [0], [1], [0, 0, 1, 1], [], []>} : vector<8x128xbf16>, vector<128x128xbf16>, vector<8x128xf32> -> vector<8x128xf32>
    %c1_41 = arith.constant 1 : index
    %c0_42 = arith.constant 0 : index
    %c0_43 = arith.constant 0 : index
    %52 = vector.load %arg8[%c1_41, %c0_42, %c0_43] : memref<5x1x128xf32, #tpu.memory_space<vmem>>, vector<1x1x128xf32>
    %53 = vector.shape_cast %52 : vector<1x1x128xf32> to vector<1x128xf32>
    %54 = vector.broadcast %53 : vector<1x128xf32> to vector<8x128xf32>
    %55 = arith.addf %51, %54 : vector<8x128xf32>
    %cst_44 = arith.constant 0.000000e+00 : f32
    %56 = vector.broadcast %cst_44 : f32 to vector<8x128xf32>
    %57 = arith.maximumf %55, %56 : vector<8x128xf32>
    %58 = arith.truncf %57 : vector<8x128xf32> to vector<8x128xbf16>
    %c1_45 = arith.constant 1 : index
    %c0_46 = arith.constant 0 : index
    %c0_47 = arith.constant 0 : index
    %59 = vector.load %arg9[%c1_45, %c0_46, %c0_47] : memref<5x128x128xbf16, #tpu.memory_space<vmem>>, vector<1x128x128xbf16>
    %60 = vector.shape_cast %59 : vector<1x128x128xbf16> to vector<128x128xbf16>
    %cst_48 = arith.constant dense<0.000000e+00> : vector<8x128xf32>
    %61 = tpu.matmul %58, %60, %cst_48 {dimension_numbers = #tpu.dot_dimension_numbers<[1], [0], [0], [1], [0, 0, 1, 1], [], []>} : vector<8x128xbf16>, vector<128x128xbf16>, vector<8x128xf32> -> vector<8x128xf32>
    %c1_49 = arith.constant 1 : index
    %c0_50 = arith.constant 0 : index
    %c0_51 = arith.constant 0 : index
    %62 = vector.load %arg10[%c1_49, %c0_50, %c0_51] : memref<5x1x128xf32, #tpu.memory_space<vmem>>, vector<1x1x128xf32>
    %63 = vector.shape_cast %62 : vector<1x1x128xf32> to vector<1x128xf32>
    %64 = vector.broadcast %63 : vector<1x128xf32> to vector<8x128xf32>
    %65 = arith.addf %61, %64 : vector<8x128xf32>
    %66 = arith.addf %45, %65 : vector<8x128xf32>
    %c2 = arith.constant 2 : index
    %c0_52 = arith.constant 0 : index
    %c0_53 = arith.constant 0 : index
    %67 = vector.load %arg5[%c2, %c0_52, %c0_53] : memref<5x8x128xbf16, #tpu.memory_space<vmem>>, vector<1x8x128xbf16>
    %68 = vector.shape_cast %67 : vector<1x8x128xbf16> to vector<8x128xbf16>
    %cst_54 = arith.constant dense<0.000000e+00> : vector<8x128xf32>
    %69 = tpu.matmul %8, %68, %cst_54 {dimension_numbers = #tpu.dot_dimension_numbers<[1], [0], [0], [1], [0, 0, 1, 1], [], []>} : vector<8x8xbf16>, vector<8x128xbf16>, vector<8x128xf32> -> vector<8x128xf32>
    %c2_55 = arith.constant 2 : index
    %c0_56 = arith.constant 0 : index
    %c0_57 = arith.constant 0 : index
    %70 = vector.load %arg6[%c2_55, %c0_56, %c0_57] : memref<5x1x128xf32, #tpu.memory_space<vmem>>, vector<1x1x128xf32>
    %71 = vector.shape_cast %70 : vector<1x1x128xf32> to vector<1x128xf32>
    %72 = vector.broadcast %71 : vector<1x128xf32> to vector<8x128xf32>
    %73 = arith.addf %69, %72 : vector<8x128xf32>
    %74 = arith.addf %66, %73 : vector<8x128xf32>
    %cst_58 = arith.constant 0.000000e+00 : f32
    %75 = vector.broadcast %cst_58 : f32 to vector<8x128xf32>
    %76 = arith.maximumf %74, %75 : vector<8x128xf32>
    %77 = arith.truncf %76 : vector<8x128xf32> to vector<8x128xbf16>
    %c2_59 = arith.constant 2 : index
    %c0_60 = arith.constant 0 : index
    %c0_61 = arith.constant 0 : index
    %78 = vector.load %arg7[%c2_59, %c0_60, %c0_61] : memref<5x128x128xbf16, #tpu.memory_space<vmem>>, vector<1x128x128xbf16>
    %79 = vector.shape_cast %78 : vector<1x128x128xbf16> to vector<128x128xbf16>
    %cst_62 = arith.constant dense<0.000000e+00> : vector<8x128xf32>
    %80 = tpu.matmul %77, %79, %cst_62 {dimension_numbers = #tpu.dot_dimension_numbers<[1], [0], [0], [1], [0, 0, 1, 1], [], []>} : vector<8x128xbf16>, vector<128x128xbf16>, vector<8x128xf32> -> vector<8x128xf32>
    %c2_63 = arith.constant 2 : index
    %c0_64 = arith.constant 0 : index
    %c0_65 = arith.constant 0 : index
    %81 = vector.load %arg8[%c2_63, %c0_64, %c0_65] : memref<5x1x128xf32, #tpu.memory_space<vmem>>, vector<1x1x128xf32>
    %82 = vector.shape_cast %81 : vector<1x1x128xf32> to vector<1x128xf32>
    %83 = vector.broadcast %82 : vector<1x128xf32> to vector<8x128xf32>
    %84 = arith.addf %80, %83 : vector<8x128xf32>
    %cst_66 = arith.constant 0.000000e+00 : f32
    %85 = vector.broadcast %cst_66 : f32 to vector<8x128xf32>
    %86 = arith.maximumf %84, %85 : vector<8x128xf32>
    %87 = arith.truncf %86 : vector<8x128xf32> to vector<8x128xbf16>
    %c2_67 = arith.constant 2 : index
    %c0_68 = arith.constant 0 : index
    %c0_69 = arith.constant 0 : index
    %88 = vector.load %arg9[%c2_67, %c0_68, %c0_69] : memref<5x128x128xbf16, #tpu.memory_space<vmem>>, vector<1x128x128xbf16>
    %89 = vector.shape_cast %88 : vector<1x128x128xbf16> to vector<128x128xbf16>
    %cst_70 = arith.constant dense<0.000000e+00> : vector<8x128xf32>
    %90 = tpu.matmul %87, %89, %cst_70 {dimension_numbers = #tpu.dot_dimension_numbers<[1], [0], [0], [1], [0, 0, 1, 1], [], []>} : vector<8x128xbf16>, vector<128x128xbf16>, vector<8x128xf32> -> vector<8x128xf32>
    %c2_71 = arith.constant 2 : index
    %c0_72 = arith.constant 0 : index
    %c0_73 = arith.constant 0 : index
    %91 = vector.load %arg10[%c2_71, %c0_72, %c0_73] : memref<5x1x128xf32, #tpu.memory_space<vmem>>, vector<1x1x128xf32>
    %92 = vector.shape_cast %91 : vector<1x1x128xf32> to vector<1x128xf32>
    %93 = vector.broadcast %92 : vector<1x128xf32> to vector<8x128xf32>
    %94 = arith.addf %90, %93 : vector<8x128xf32>
    %95 = arith.addf %74, %94 : vector<8x128xf32>
    %c3 = arith.constant 3 : index
    %c0_74 = arith.constant 0 : index
    %c0_75 = arith.constant 0 : index
    %96 = vector.load %arg5[%c3, %c0_74, %c0_75] : memref<5x8x128xbf16, #tpu.memory_space<vmem>>, vector<1x8x128xbf16>
    %97 = vector.shape_cast %96 : vector<1x8x128xbf16> to vector<8x128xbf16>
    %cst_76 = arith.constant dense<0.000000e+00> : vector<8x128xf32>
    %98 = tpu.matmul %8, %97, %cst_76 {dimension_numbers = #tpu.dot_dimension_numbers<[1], [0], [0], [1], [0, 0, 1, 1], [], []>} : vector<8x8xbf16>, vector<8x128xbf16>, vector<8x128xf32> -> vector<8x128xf32>
    %c3_77 = arith.constant 3 : index
    %c0_78 = arith.constant 0 : index
    %c0_79 = arith.constant 0 : index
    %99 = vector.load %arg6[%c3_77, %c0_78, %c0_79] : memref<5x1x128xf32, #tpu.memory_space<vmem>>, vector<1x1x128xf32>
    %100 = vector.shape_cast %99 : vector<1x1x128xf32> to vector<1x128xf32>
    %101 = vector.broadcast %100 : vector<1x128xf32> to vector<8x128xf32>
    %102 = arith.addf %98, %101 : vector<8x128xf32>
    %103 = arith.addf %95, %102 : vector<8x128xf32>
    %cst_80 = arith.constant 0.000000e+00 : f32
    %104 = vector.broadcast %cst_80 : f32 to vector<8x128xf32>
    %105 = arith.maximumf %103, %104 : vector<8x128xf32>
    %106 = arith.truncf %105 : vector<8x128xf32> to vector<8x128xbf16>
    %c3_81 = arith.constant 3 : index
    %c0_82 = arith.constant 0 : index
    %c0_83 = arith.constant 0 : index
    %107 = vector.load %arg7[%c3_81, %c0_82, %c0_83] : memref<5x128x128xbf16, #tpu.memory_space<vmem>>, vector<1x128x128xbf16>
    %108 = vector.shape_cast %107 : vector<1x128x128xbf16> to vector<128x128xbf16>
    %cst_84 = arith.constant dense<0.000000e+00> : vector<8x128xf32>
    %109 = tpu.matmul %106, %108, %cst_84 {dimension_numbers = #tpu.dot_dimension_numbers<[1], [0], [0], [1], [0, 0, 1, 1], [], []>} : vector<8x128xbf16>, vector<128x128xbf16>, vector<8x128xf32> -> vector<8x128xf32>
    %c3_85 = arith.constant 3 : index
    %c0_86 = arith.constant 0 : index
    %c0_87 = arith.constant 0 : index
    %110 = vector.load %arg8[%c3_85, %c0_86, %c0_87] : memref<5x1x128xf32, #tpu.memory_space<vmem>>, vector<1x1x128xf32>
    %111 = vector.shape_cast %110 : vector<1x1x128xf32> to vector<1x128xf32>
    %112 = vector.broadcast %111 : vector<1x128xf32> to vector<8x128xf32>
    %113 = arith.addf %109, %112 : vector<8x128xf32>
    %cst_88 = arith.constant 0.000000e+00 : f32
    %114 = vector.broadcast %cst_88 : f32 to vector<8x128xf32>
    %115 = arith.maximumf %113, %114 : vector<8x128xf32>
    %116 = arith.truncf %115 : vector<8x128xf32> to vector<8x128xbf16>
    %c3_89 = arith.constant 3 : index
    %c0_90 = arith.constant 0 : index
    %c0_91 = arith.constant 0 : index
    %117 = vector.load %arg9[%c3_89, %c0_90, %c0_91] : memref<5x128x128xbf16, #tpu.memory_space<vmem>>, vector<1x128x128xbf16>
    %118 = vector.shape_cast %117 : vector<1x128x128xbf16> to vector<128x128xbf16>
    %cst_92 = arith.constant dense<0.000000e+00> : vector<8x128xf32>
    %119 = tpu.matmul %116, %118, %cst_92 {dimension_numbers = #tpu.dot_dimension_numbers<[1], [0], [0], [1], [0, 0, 1, 1], [], []>} : vector<8x128xbf16>, vector<128x128xbf16>, vector<8x128xf32> -> vector<8x128xf32>
    %c3_93 = arith.constant 3 : index
    %c0_94 = arith.constant 0 : index
    %c0_95 = arith.constant 0 : index
    %120 = vector.load %arg10[%c3_93, %c0_94, %c0_95] : memref<5x1x128xf32, #tpu.memory_space<vmem>>, vector<1x1x128xf32>
    %121 = vector.shape_cast %120 : vector<1x1x128xf32> to vector<1x128xf32>
    %122 = vector.broadcast %121 : vector<1x128xf32> to vector<8x128xf32>
    %123 = arith.addf %119, %122 : vector<8x128xf32>
    %124 = arith.addf %103, %123 : vector<8x128xf32>
    %c4 = arith.constant 4 : index
    %c0_96 = arith.constant 0 : index
    %c0_97 = arith.constant 0 : index
    %125 = vector.load %arg5[%c4, %c0_96, %c0_97] : memref<5x8x128xbf16, #tpu.memory_space<vmem>>, vector<1x8x128xbf16>
    %126 = vector.shape_cast %125 : vector<1x8x128xbf16> to vector<8x128xbf16>
    %cst_98 = arith.constant dense<0.000000e+00> : vector<8x128xf32>
    %127 = tpu.matmul %8, %126, %cst_98 {dimension_numbers = #tpu.dot_dimension_numbers<[1], [0], [0], [1], [0, 0, 1, 1], [], []>} : vector<8x8xbf16>, vector<8x128xbf16>, vector<8x128xf32> -> vector<8x128xf32>
    %c4_99 = arith.constant 4 : index
    %c0_100 = arith.constant 0 : index
    %c0_101 = arith.constant 0 : index
    %128 = vector.load %arg6[%c4_99, %c0_100, %c0_101] : memref<5x1x128xf32, #tpu.memory_space<vmem>>, vector<1x1x128xf32>
    %129 = vector.shape_cast %128 : vector<1x1x128xf32> to vector<1x128xf32>
    %130 = vector.broadcast %129 : vector<1x128xf32> to vector<8x128xf32>
    %131 = arith.addf %127, %130 : vector<8x128xf32>
    %132 = arith.addf %124, %131 : vector<8x128xf32>
    %cst_102 = arith.constant 0.000000e+00 : f32
    %133 = vector.broadcast %cst_102 : f32 to vector<8x128xf32>
    %134 = arith.maximumf %132, %133 : vector<8x128xf32>
    %135 = arith.truncf %134 : vector<8x128xf32> to vector<8x128xbf16>
    %c4_103 = arith.constant 4 : index
    %c0_104 = arith.constant 0 : index
    %c0_105 = arith.constant 0 : index
    %136 = vector.load %arg7[%c4_103, %c0_104, %c0_105] : memref<5x128x128xbf16, #tpu.memory_space<vmem>>, vector<1x128x128xbf16>
    %137 = vector.shape_cast %136 : vector<1x128x128xbf16> to vector<128x128xbf16>
    %cst_106 = arith.constant dense<0.000000e+00> : vector<8x128xf32>
    %138 = tpu.matmul %135, %137, %cst_106 {dimension_numbers = #tpu.dot_dimension_numbers<[1], [0], [0], [1], [0, 0, 1, 1], [], []>} : vector<8x128xbf16>, vector<128x128xbf16>, vector<8x128xf32> -> vector<8x128xf32>
    %c4_107 = arith.constant 4 : index
    %c0_108 = arith.constant 0 : index
    %c0_109 = arith.constant 0 : index
    %139 = vector.load %arg8[%c4_107, %c0_108, %c0_109] : memref<5x1x128xf32, #tpu.memory_space<vmem>>, vector<1x1x128xf32>
    %140 = vector.shape_cast %139 : vector<1x1x128xf32> to vector<1x128xf32>
    %141 = vector.broadcast %140 : vector<1x128xf32> to vector<8x128xf32>
    %142 = arith.addf %138, %141 : vector<8x128xf32>
    %cst_110 = arith.constant 0.000000e+00 : f32
    %143 = vector.broadcast %cst_110 : f32 to vector<8x128xf32>
    %144 = arith.maximumf %142, %143 : vector<8x128xf32>
    %145 = arith.truncf %144 : vector<8x128xf32> to vector<8x128xbf16>
    %c4_111 = arith.constant 4 : index
    %c0_112 = arith.constant 0 : index
    %c0_113 = arith.constant 0 : index
    %146 = vector.load %arg9[%c4_111, %c0_112, %c0_113] : memref<5x128x128xbf16, #tpu.memory_space<vmem>>, vector<1x128x128xbf16>
    %147 = vector.shape_cast %146 : vector<1x128x128xbf16> to vector<128x128xbf16>
    %cst_114 = arith.constant dense<0.000000e+00> : vector<8x128xf32>
    %148 = tpu.matmul %145, %147, %cst_114 {dimension_numbers = #tpu.dot_dimension_numbers<[1], [0], [0], [1], [0, 0, 1, 1], [], []>} : vector<8x128xbf16>, vector<128x128xbf16>, vector<8x128xf32> -> vector<8x128xf32>
    %c4_115 = arith.constant 4 : index
    %c0_116 = arith.constant 0 : index
    %c0_117 = arith.constant 0 : index
    %149 = vector.load %arg10[%c4_115, %c0_116, %c0_117] : memref<5x1x128xf32, #tpu.memory_space<vmem>>, vector<1x1x128xf32>
    %150 = vector.shape_cast %149 : vector<1x1x128xf32> to vector<1x128xf32>
    %151 = vector.broadcast %150 : vector<1x128xf32> to vector<8x128xf32>
    %152 = arith.addf %148, %151 : vector<8x128xf32>
    %153 = arith.addf %132, %152 : vector<8x128xf32>
    %cst_118 = arith.constant 0.000000e+00 : f32
    %154 = vector.broadcast %cst_118 : f32 to vector<8x128xf32>
    %155 = arith.maximumf %153, %154 : vector<8x128xf32>
    %156 = arith.truncf %155 : vector<8x128xf32> to vector<8x128xbf16>
    %c0_119 = arith.constant 0 : index
    %c0_120 = arith.constant 0 : index
    %157 = vector.load %arg11[%c0_119, %c0_120] : memref<128x4xbf16, #tpu.memory_space<vmem>>, vector<128x4xbf16>
    %cst_121 = arith.constant dense<0.000000e+00> : vector<8x4xf32>
    %158 = tpu.matmul %156, %157, %cst_121 {dimension_numbers = #tpu.dot_dimension_numbers<[1], [0], [0], [1], [0, 0, 1, 1], [], []>} : vector<8x128xbf16>, vector<128x4xbf16>, vector<8x4xf32> -> vector<8x4xf32>
    %c0_122 = arith.constant 0 : index
    %c0_123 = arith.constant 0 : index
    %159 = vector.load %arg12[%c0_122, %c0_123] : memref<1x4xf32, #tpu.memory_space<vmem>>, vector<1x4xf32>
    %160 = vector.broadcast %159 : vector<1x4xf32> to vector<8x4xf32>
    %161 = arith.addf %158, %160 : vector<8x4xf32>
    %c0_124 = arith.constant 0 : index
    %c0_125 = arith.constant 0 : index
    %162 = vector.load %arg13[%c0_124, %c0_125] : memref<8x4xf32, #tpu.memory_space<vmem>>, vector<8x4xf32>
    tpu.vector_store %arg13[%c0_124, %c0_125], %161 {strides = array<i32>} : memref<8x4xf32, #tpu.memory_space<vmem>>, vector<8x4xf32>,
    return
  }
  func.func @transform_0(%arg0: i32) -> (i32, i32) {
    %c0_i32 = arith.constant 0 : i32
    %c0_i32_0 = arith.constant 0 : i32
    return %arg0, %c0_i32 : i32, i32
  }
  func.func @transform_1(%arg0: i32) -> (i32, i32) {
    %c0_i32 = arith.constant 0 : i32
    %c0_i32_0 = arith.constant 0 : i32
    return %arg0, %c0_i32 : i32, i32
  }
  func.func @transform_2(%arg0: i32) -> (i32, i32) {
    %c0_i32 = arith.constant 0 : i32
    %c0_i32_0 = arith.constant 0 : i32
    %c0_i32_1 = arith.constant 0 : i32
    return %c0_i32, %c0_i32_0 : i32, i32
  }
  func.func @transform_3(%arg0: i32) -> (i32, i32) {
    %c0_i32 = arith.constant 0 : i32
    %c0_i32_0 = arith.constant 0 : i32
    %c0_i32_1 = arith.constant 0 : i32
    return %c0_i32, %c0_i32_0 : i32, i32
  }
  func.func @transform_4(%arg0: i32) -> (i32, i32, i32) {
    %c0_i32 = arith.constant 0 : i32
    %c0_i32_0 = arith.constant 0 : i32
    %c0_i32_1 = arith.constant 0 : i32
    %c0_i32_2 = arith.constant 0 : i32
    return %c0_i32, %c0_i32_0, %c0_i32_1 : i32, i32, i32
  }
  func.func @transform_5(%arg0: i32) -> (i32, i32, i32) {
    %c0_i32 = arith.constant 0 : i32
    %c0_i32_0 = arith.constant 0 : i32
    %c0_i32_1 = arith.constant 0 : i32
    %c0_i32_2 = arith.constant 0 : i32
    return %c0_i32, %c0_i32_0, %c0_i32_1 : i32, i32, i32
  }
  func.func @transform_6(%arg0: i32) -> (i32, i32, i32) {
    %c0_i32 = arith.constant 0 : i32
    %c0_i32_0 = arith.constant 0 : i32
    %c0_i32_1 = arith.constant 0 : i32
    %c0_i32_2 = arith.constant 0 : i32
    return %c0_i32, %c0_i32_0, %c0_i32_1 : i32, i32, i32
  }
  func.func @transform_7(%arg0: i32) -> (i32, i32, i32) {
    %c0_i32 = arith.constant 0 : i32
    %c0_i32_0 = arith.constant 0 : i32
    %c0_i32_1 = arith.constant 0 : i32
    %c0_i32_2 = arith.constant 0 : i32
    return %c0_i32, %c0_i32_0, %c0_i32_1 : i32, i32, i32
  }
  func.func @transform_8(%arg0: i32) -> (i32, i32, i32) {
    %c0_i32 = arith.constant 0 : i32
    %c0_i32_0 = arith.constant 0 : i32
    %c0_i32_1 = arith.constant 0 : i32
    %c0_i32_2 = arith.constant 0 : i32
    return %c0_i32, %c0_i32_0, %c0_i32_1 : i32, i32, i32
  }
  func.func @transform_9(%arg0: i32) -> (i32, i32, i32) {
    %c0_i32 = arith.constant 0 : i32
    %c0_i32_0 = arith.constant 0 : i32
    %c0_i32_1 = arith.constant 0 : i32
    %c0_i32_2 = arith.constant 0 : i32
    return %c0_i32, %c0_i32_0, %c0_i32_1 : i32, i32, i32
  }
  func.func @transform_10(%arg0: i32) -> (i32, i32) {
    %c0_i32 = arith.constant 0 : i32
    %c0_i32_0 = arith.constant 0 : i32
    %c0_i32_1 = arith.constant 0 : i32
    return %c0_i32, %c0_i32_0 : i32, i32
  }
  func.func @transform_11(%arg0: i32) -> (i32, i32) {
    %c0_i32 = arith.constant 0 : i32
    %c0_i32_0 = arith.constant 0 : i32
    %c0_i32_1 = arith.constant 0 : i32
    return %c0_i32, %c0_i32_0 : i32, i32
  }
  func.func @transform_12(%arg0: i32) -> (i32, i32) {
    %c0_i32 = arith.constant 0 : i32
    %c0_i32_0 = arith.constant 0 : i32
    return %arg0, %c0_i32 : i32, i32
  }
}

</mosaic_0001>

<bundles_post_ra>
// kernel: tpu_custom_call.1
= control target key start
LH: loop header
LB: loop body
LE: loop exit
PB: predicated region body
PF: predicated region fallthrough
CT: control target
= control target key end

     0   :  { %17 = vsyncpa [#allocation3], 0  ;;  %s3340_s0 = inlined_call_operand.vmem [shape: f32[64,24], index: 0, kind: input, shape index: {}]   ;;  %s3341_s1 = inlined_call_operand.vmem [shape: f32[64,8], index: 1, kind: input, shape index: {}]   ;;  %s3342_s2 = inlined_call_operand.vmem [shape: bf16[24,128], index: 2, kind: input, shape index: {}]   ;;  %s3343_s3 = inlined_call_operand.vmem [shape: f32[1,128], index: 3, kind: input, shape index: {}]   ;;  %s3344_s4 = inlined_call_operand.vmem [shape: bf16[5,8,128], index: 4, kind: input, shape index: {}]   ;;  %s3345_s5 = inlined_call_operand.vmem [shape: f32[5,1,128], index: 5, kind: input, shape index: {}]   ;;  %s3346_s6 = inlined_call_operand.hbm [shape: bf16[5,128,128], index: 6, kind: input, shape index: {}]   ;;  %s3347_s7 = inlined_call_operand.vmem [shape: f32[5,1,128], index: 7, kind: input, shape index: {}]   ;;  %s3348_s8 = inlined_call_operand.hbm [shape: bf16[5,128,128], index: 8, kind: input, shape index: {}]   ;;  %s3349_s9 = inlined_call_operand.vmem [shape: f32[5,1,128], index: 9, kind: input, shape index: {}]   ;;  %s3350_s10 = inlined_call_operand.vmem [shape: bf16[128,4], index: 10, kind: input, shape index: {}]   ;;  %s3351_s11 = inlined_call_operand.vmem [shape: f32[1,4], index: 11, kind: input, shape index: {}]   ;;  %s3352_s12 = inlined_call_operand.vmem [shape: f32[64,4], index: 12, kind: output, shape index: {}]  }
   0x1   :  { %18 = vsyncpa [#allocation5], 0  ;;  %s2966_s21 = smov 0  }
   0x2 LB: > { %s2972_s22 = sadd.s32 4294967295, %s2893_s21   ;;  %p2155_p0 = scmp.ge.s32.totalorder %s2893_s21, 1  ;;  %s2893_s21 = sphi %s2966_s21, %s24_s21  }
   0x3   : > { %p317_p1 = scmp.lt.s32.totalorder %s2893_s21, 9  ;;  %s2895_s23 = smov [#allocation2]  }
   0x4   : > { %s341_s24 = sshll.u32 %s2895_s23, 4  ;;  %p3353_p3 = scmp.eq.s32.totalorder %s2972_s22, 0  ;;  %s342_s24 = int_to_ptr.vmem [resolvable:$true] %s341_s24 }
   0x5   : > { %p2976_p2 = pnand %p2155_p0, %p317_p1  ;;  %s2896_s26 = smov [#allocation4]  }
   0x6   : > { %s357_s27 = sshll.u32 %s2896_s26, 4  ;;  %s2823_s13 = scalar_lea.hbm %s3346_s6, 5120  ;;  %s2989_s27 = int_to_ptr.vmem [resolvable:$true] %s357_s27 }
   0x7   : > { %s3355_s25 = scalar_select %p2976_p2, 1, 0 }
   0x8   : > { %p2708_p4 = pneg %p2976_p2  ;;  %p2824_p6 = scmp.ne.s32.totalorder %s3346_s6, %s2823_s13 }
   0x9   : > { %p2830_p10 = scmp.lt.u32.totalorder %s2823_s13, %s3346_s6 }
   0xa   : > { %p2985_p5 = pnand %p3353_p3, %p2708_p4 }
   0xc   : > { %p2825_p7 = pneg %p2985_p5 }
   0xe   : > { %p2826_p8 = pnand %p2825_p7, %p2824_p6 }
  0x10   : > { %p2827_p9 = pneg %p2826_p8 }
  0x12   : > { %p2832_p11 = pnand %p2830_p10, %p2827_p9 }
  0x14   : > { %2835 = shalt.err (!%p2832_p11)
}
  0x15   : > { %s2836_s18 = scalar_lea.vmem %s342_s24, 5120  ;;  %p2844_p1 = scmp.lt.s32.totalorder %s342_s24, %s342_s24 }
  0x16   : > { %p2837_p12 = scmp.ne.s32.totalorder %s342_s24, %s2836_s18  ;;  %p2845_p4 = scmp.lt.s32.totalorder %s2836_s18, %s2836_s18 }
  0x18   : > { %p2839_p13 = pnand %p2837_p12, %p2825_p7  ;;  %p2846_p3 = por %p2845_p4, %p2844_p1 }
  0x1a   : > { %p2840_p0 = pneg %p2839_p13 }
  0x1c   : > { %p2847_p2 = pnand %p2846_p3, %p2840_p0 }
  0x1e   : > { %2850 = shalt.err (!%p2847_p2)
}
  0x1f   : > { %s2897_s19 = smov 64   ;;  %s2898_s20 = smov 4  }
  0x20   : > { %2711 = dma.hbm_to_vmem [thread:$0]  (!%p2985_p5), %s3346_s6, 5120, %s342_s24, [#allocation3], %s2897_s19, %s2897_s19, %s2898_s20  }
  0x21   : > { %s2851_s13 = scalar_lea.hbm %s3348_s8, 5120 }
  0x22   : > { %p2852_p6 = scmp.ne.s32.totalorder %s3348_s8, %s2851_s13  ;;  %p2858_p8 = scmp.lt.u32.totalorder %s2851_s13, %s3348_s8 }
  0x24   : > { %p2854_p2 = pnand %p2852_p6, %p2825_p7 }
  0x26   : > { %p2855_p3 = pneg %p2854_p2 }
  0x28   : > { %p2860_p9 = pnand %p2858_p8, %p2855_p3 }
  0x2a   : > { %2863 = shalt.err (!%p2860_p9)
}
  0x2b   : > { %s2864_s24 = scalar_lea.vmem %s2989_s27, 5120  ;;  %p2872_p13 = scmp.lt.s32.totalorder %s2989_s27, %s2989_s27 }
  0x2c   : > { %p2865_p10 = scmp.ne.s32.totalorder %s2989_s27, %s2864_s24  ;;  %p2873_p0 = scmp.lt.s32.totalorder %s2864_s24, %s2864_s24 }
  0x2e   : > { %p2867_p11 = pnand %p2865_p10, %p2825_p7  ;;  %p2874_p1 = por %p2873_p0, %p2872_p13 }
  0x30   : > { %p2868_p12 = pneg %p2867_p11 }
  0x32   : > { %p2875_p4 = pnand %p2874_p1, %p2868_p12 }
  0x34   : > { %2878 = shalt.err (!%p2875_p4)
}
  0x35   : > { %2714 = dma.hbm_to_vmem [thread:$0]  (!%p2985_p5), %s3348_s8, 5120, %s2989_s27, [#allocation5], %s2897_s19, %s2897_s19, %s2898_s20  }
  0x36   : > { %p3357_p6 = scmp.ne.s32.totalorder %s3355_s25, 0 }
  0x37   : > { %p3358_p2 = scmp.eq.s32.totalorder (!%p3357_p6), %s2972_s22, 0 }
  0x38   : > { %396 = sbr.rel (%p3357_p6) target bundleno = 2752 (0xac0), region = 68 }
  0x3f   : > { %2884 = dma.done.wait (%p3358_p2), [#allocation3], 5120   ;;  %p3359_p7 = pmov %p3358_p2 }
  0x40   : > { %p3360_p3 = pmov %p3358_p2 }
  0x41   : > { %2886 = vsyncadd (%p3359_p7), [#allocation3], 4294962176 }
  0x42   : > { %2888 = dma.done.wait (%p3360_p3), [#allocation5], 5120   ;;  %p3361_p8 = pmov %p3358_p2 }
  0x43   : > { %p444_p9 = scmp.lt.s32.totalorder %s2972_s22, 7  ;;  %v2899_v0 = vmov 0.0   ;;  %vm2900_vm0 = vmmov 0   ;;  %v2733_v1 = vld [vmem:[%s3342_s2] sm:$0xff]   ;;  %vm482_vm1 = vcmask 1043456   ;;  %v2736_v8 = vld [vmem:[#allocation2 + $0x8] sm:$0xff]  }
  0x44   : > { %2890 = vsyncadd (%p3361_p8), [#allocation5], 4294962176  ;;  %2408 = vmatprep.subr.bf16.mxu0 %v2899_v0  ;;  %2412 = vmatprep.mubr.msk.bf16.mxu0 %vm2900_vm0, %v2899_v0  ;;  %v2734_v2 = vld [vmem:[%s3342_s2 + $0x8] ss:$0 sps:$4 sm:$0xff]   ;;  %v528_v5 = vld [vmem:[%s3344_s4] sm:$0xf] }
  0x45   : > { %s3363_s22 = smov (!%p444_p9, %s2972_s22), 7  ;;  %2422 = vmatprep.subr.bf16.mxu1 %v2899_v0  ;;  %2438 = vmatprep.mubr.msk.bf16.mxu1 %vm2900_vm0, %v2899_v0  ;;  %v484_v4 = vsel %vm482_vm1, %v2734_v2, 0  ;;  %v2735_v6 = vld [vmem:[#allocation2] sm:$0xff]   ;;  %vm478_vm2 = vcmask 195584   ;;  %v541_v9 = vsel %vm482_vm1, %v528_v5, 0  ;;  %v2737_v10 = vld [vmem:[#allocation2 + $0x10] sm:$0xff]  }
  0x46   : > { %s3056_s25 = sshll.u32 %s3363_s22, 3  ;;  %2409 = vmatpush3.bf16.msra.mxu0 %v2733_v1  ;;  %2423 = vmatpush3.bf16.msra.mxu1 %v2735_v6  ;;  %vm536_vm3 = vcmask 64512   ;;  %v2738_v11 = vld [vmem:[#allocation2 + $0x18] sm:$0xff]   ;;  %v2739_v13 = vld [vmem:[#allocation2 + $0x20] sm:$0xff]   ;;  %v2740_v15 = vld [vmem:[#allocation2 + $0x28] sm:$0xff]   ;;  %vm2064_vm4 = vcmask 31744  }
  0x47   : > { %s447_s19 = scalar_lea.vmem %s3340_s0, %s3056_s25  ;;  %2410 = vmatprep.subr.bf16.mxu0 %v2899_v0  ;;  %2424 = vmatprep.subr.bf16.mxu1 %v2899_v0  ;;  %s451_s16 = scalar_lea.vmem %s3341_s1, %s3056_s25  ;;  %v2741_v16 = vld [vmem:[#allocation2 + $0x30] sm:$0xff]   ;;  %v2742_v17 = vld [vmem:[#allocation2 + $0x38] sm:$0xff]   ;;  %v2743_v18 = vld [vmem:[#allocation4] sm:$0xff]  }
  0x48   : > { %v457_v3 = vld [vmem:[%s447_s19] sm:$0xff]  ;;  %v2744_v19 = vld [vmem:[#allocation4 + $0x8] sm:$0xff]   ;;  %v2745_v20 = vld [vmem:[#allocation4 + $0x10] sm:$0xff]   ;;  %s455_s13 = scalar_lea.vmem %s3352_s12, %s3056_s25 }
  0x49   : > { %v458_v7 = vpack.c.bf16 %v457_v3, %v457_v3  ;;  %v526_v12 = vld [vmem:[%s451_s16] sm:$0xff]  ;;  %v2746_v21 = vld [vmem:[#allocation4 + $0x18] sm:$0xff]   ;;  %v2748_v23 = vld [vmem:[#allocation4 + $0x28] sm:$0xff]  }
  0x4a   : > { %2411 = vmatpush3.bf16.msra.mxu0 %v484_v4  ;;  %2425 = vmatpush3.bf16.msra.mxu1 %v2736_v8  ;;  %v3085_v14 = vpack.c.bf16 %v526_v12, %v526_v12  ;;  %v2747_v22 = vld [vmem:[#allocation4 + $0x20] sm:$0xff]   ;;  %v2749_v34 = vld [vmem:[#allocation4 + $0x30] sm:$0xff]   ;;  %v2750_v35 = vld [vmem:[#allocation4 + $0x38] sm:$0xff]  }
  0x4b   : > { %2416 = vmatprep.subr.bf16.mxu0 %v2899_v0  ;;  %2426 = vmatprep.subr.bf16.mxu1 %v2899_v0  ;;  %v3105_v24 = vld [vmem:[%s3343_s3] ss:$0 sm:$0xff]  ;;  %v2752_v37 = vld [vmem:[#allocation2 + $0x48] sm:$0xff]   ;;  %v2753_v38 = vld [vmem:[#allocation2 + $0x50] sm:$0xff]  }
  0x4c   : > { %v3110_v25 = vld [vmem:[%s3345_s5] ss:$0 sm:$0xff]  ;;  %v2754_v39 = vld [vmem:[#allocation2 + $0x58] sm:$0xff]   ;;  %v2756_v41 = vld [vmem:[#allocation2 + $0x68] sm:$0xff]   ;;  %v521_v60 = vadd.f32 nan, %v3105_v24 }
  0x4d   : > { %2413 = vmatmul.mubr.msk.bf16.vlgmr.msra.gmra.mrb[0].mxu0 %vm478_vm2, %v458_v7  ;;  %v2666_v26 = vadd.f32 %v3110_v25, %v3105_v24  ;;  %v2751_v36 = vld [vmem:[#allocation2 + $0x40] sm:$0xff]   ;;  %v2757_v52 = vld [vmem:[#allocation2 + $0x70] sm:$0xff]   ;;  %v2758_v53 = vld [vmem:[#allocation2 + $0x78] sm:$0xff]  }
  0x4e   : > { %2417 = vmatpush3.bf16.msra.mxu0 %v541_v9  ;;  %2418 = vmatprep.mubr.msk.bf16.mxu0 %vm2900_vm0, %v2899_v0  ;;  %v2755_v40 = vld [vmem:[#allocation2 + $0x60] sm:$0xff]   ;;  %v2760_v55 = vld [vmem:[#allocation4 + $0x48] sm:$0xff]   ;;  %v2761_v56 = vld [vmem:[#allocation4 + $0x50] sm:$0xff]  }
  0x4f   : > { %2442 = vmatprep.subr.bf16.mxu0 %v2899_v0  ;;  %2427 = vmatpush3.bf16.msra.mxu1 %v2737_v10  ;;  %v2171_v42 = vld [vmem:[%s3347_s7] ss:$0 sm:$0xff]  ;;  %v2189_v47 = vld [vmem:[%s3344_s4 + $0x4] sm:$0xf]  ;;  %v2762_v57 = vld [vmem:[#allocation4 + $0x58] sm:$0xff]  }
  0x50   : > { %2428 = vmatprep.subr.bf16.mxu1 %v2899_v0  ;;  %v822_v51 = vsel %vm482_vm1, %v2189_v47, 0  ;;  %v2759_v54 = vld [vmem:[#allocation4 + $0x40] sm:$0xff]   ;;  %v2764_v59 = vld [vmem:[#allocation4 + $0x68] sm:$0xff]  }
  0x51   : > { %v2763_v58 = vld [vmem:[#allocation4 + $0x60] sm:$0xff]  }
  0x52   : > { %v2180_v63 = vld [vmem:[%s3349_s9] ss:$0 sm:$0xff]  ;;  %v2191_v2 = vld [vmem:[%s3345_s5 + $0x1] ss:$0 sm:$0xff] }
  0x53   : > { %2429 = vmatpush3.bf16.msra.mxu1 %v2738_v11  ;;  %v805_v3 = vadd.f32 nan, %v2180_v63  ;;  %v2194_v24 = vld [vmem:[%s3347_s7 + $0x1] ss:$0 sm:$0xff] }
  0x54   : > { %2430 = vmatprep.subr.bf16.mxu1 %v2899_v0 }
  0x57   : > { %2431 = vmatpush3.bf16.msra.mxu1 %v2739_v13 }
  0x58   : > { %2432 = vmatprep.subr.bf16.mxu1 %v2899_v0 }
  0x59   : > { %2419 = vmatmul.mubr.msk.bf16.vlgmr.msra.gmra.mrb[0].mxu0 %vm536_vm3, %v3085_v14 }
  0x5a   : > { %2458 = vmatprep.mubr.msk.bf16.mxu0 %vm2900_vm0, %v2899_v0  ;;  %2443 = vmatpush3.bf16.msra.mxu0 %v2743_v18  ;;  %v2767_v18 = vld [vmem:[#allocation2 + $0x80] sm:$0xff]  }
  0x5b   : > { %2433 = vmatpush3.bf16.msra.mxu1 %v2740_v15  ;;  %2444 = vmatprep.subr.bf16.mxu0 %v2899_v0 }
  0x5c   : > { %2434 = vmatprep.subr.bf16.mxu1 %v2899_v0 }
  0x5e   : > { %2445 = vmatpush3.bf16.msra.mxu0 %v2744_v19  ;;  %v2768_v19 = vld [vmem:[#allocation2 + $0x88] sm:$0xff]  }
  0x5f   : > { %2435 = vmatpush3.bf16.msra.mxu1 %v2741_v16  ;;  %2446 = vmatprep.subr.bf16.mxu0 %v2899_v0  ;;  %v2765_v16 = vld [vmem:[#allocation4 + $0x70] sm:$0xff]  }
  0x60   : > { %2436 = vmatprep.subr.bf16.mxu1 %v2899_v0 }
  0x62   : > { %2447 = vmatpush3.bf16.msra.mxu0 %v2745_v20  ;;  %v2769_v20 = vld [vmem:[#allocation2 + $0x90] sm:$0xff]  }
  0x63   : > { %2437 = vmatpush3.bf16.msra.mxu1 %v2742_v17  ;;  %2448 = vmatprep.subr.bf16.mxu0 %v2899_v0  ;;  %v2766_v17 = vld [vmem:[#allocation4 + $0x78] sm:$0xff]  }
  0x64   : > { %2468 = vmatprep.subr.bf16.mxu1 %v2899_v0 }
  0x66   : > { %2449 = vmatpush3.bf16.msra.mxu0 %v2746_v21  ;;  %v2770_v21 = vld [vmem:[#allocation2 + $0x98] sm:$0xff]  }
  0x67   : > { %2450 = vmatprep.subr.bf16.mxu0 %v2899_v0 }
  0x6a   : > { %2451 = vmatpush3.bf16.msra.mxu0 %v2747_v22  ;;  %v2771_v22 = vld [vmem:[#allocation2 + $0xa0] sm:$0xff]  }
  0x6b   : > { %2452 = vmatprep.subr.bf16.mxu0 %v2899_v0 }
  0x6e   : > { %2453 = vmatpush3.bf16.msra.mxu0 %v2748_v23  ;;  %v2772_v23 = vld [vmem:[#allocation2 + $0xa8] sm:$0xff]  }
  0x6f   : > { %2454 = vmatprep.subr.bf16.mxu0 %v2899_v0 }
  0x72   : > { %2455 = vmatpush3.bf16.msra.mxu0 %v2749_v34  ;;  %v2773_v34 = vld [vmem:[#allocation2 + $0xb0] sm:$0xff]  }
  0x73   : > { %2456 = vmatprep.subr.bf16.mxu0 %v2899_v0 }
  0x76   : > { %2457 = vmatpush3.bf16.msra.mxu0 %v2750_v35  ;;  %v2774_v35 = vld [vmem:[#allocation2 + $0xb8] sm:$0xff]  }
  0x77   : > { %2462 = vmatprep.subr.bf16.mxu0 %v2899_v0 }
 0x12c   : > { %v3114_v27 = vpop.f32.mrb[0].mxu0 }
 0x12d   : > { %v3117_v28 = vadd.f32 %v2666_v26, %v3114_v27  ;;  %v2420_v29 = vpop.f32.mrb[1].mxu0  ;;  %v578_v61 = vadd.f32 %v3110_v25, %v3114_v27 }
 0x12e   : > { %v580_v30 = vpop.f32.mrb[2].mxu0  ;;  %v2213_v29 = vld [vmem:[%s3344_s4 + $0x8] sm:$0xf] }
 0x12f   : > { %v584_v31 = vmax.f32 %v3117_v28, 0.0  ;;  %v2421_v32 = vpop.f32.mrb[3].mxu0  ;;  %v583_v62 = vadd.f32 %v578_v61, %v521_v60  ;;  %v810_v6 = vadd.f32 %v3117_v28, %v805_v3  ;;  %v2784_v60 = vld [vmem:[#allocation2 + $0xc8] sm:$0xff]   ;;  %v2785_v61 = vld [vmem:[#allocation2 + $0xd0] sm:$0xff]  }
 0x131   : > { %v585_v33 = vpack.c.bf16 %v584_v31, %v584_v31  ;;  %v2668_v1 = vadd.f32 %v2180_v63, %v583_v62  ;;  %v2786_v62 = vld [vmem:[#allocation2 + $0xd8] sm:$0xff]   ;;  %v2787_v63 = vld [vmem:[#allocation2 + $0xe0] sm:$0xff]  }
 0x133   : > { %2439 = vmatmul.mubr.bf16.vlgmr.msra.gmra.mrb[0].mxu1 %v585_v33  ;;  %v2669_v4 = vadd.f32 %v2668_v1, %v2191_v2  ;;  %v1107_v33 = vsel %vm482_vm1, %v2213_v29, 0  ;;  %v2788_v1 = vld [vmem:[#allocation2 + $0xe8] sm:$0xff]   ;;  %v2791_v29 = vld [vmem:[#allocation4 + $0xc0] sm:$0xff]  }
 0x134   : > { %2484 = vmatprep.mubr.msk.bf16.mxu1 %vm2900_vm0, %v2899_v0  ;;  %2469 = vmatpush3.bf16.msra.mxu1 %v2751_v36  ;;  %v2775_v36 = vld [vmem:[#allocation4 + $0x80] sm:$0xff]  }
 0x135   : > { %2470 = vmatprep.subr.bf16.mxu1 %v2899_v0 }
 0x138   : > { %2471 = vmatpush3.bf16.msra.mxu1 %v2752_v37  ;;  %v2776_v37 = vld [vmem:[#allocation4 + $0x88] sm:$0xff]  }
 0x139   : > { %2472 = vmatprep.subr.bf16.mxu1 %v2899_v0 }
 0x13c   : > { %2473 = vmatpush3.bf16.msra.mxu1 %v2753_v38  ;;  %v2777_v38 = vld [vmem:[#allocation4 + $0x90] sm:$0xff]  }
 0x13d   : > { %2474 = vmatprep.subr.bf16.mxu1 %v2899_v0 }
 0x140   : > { %2475 = vmatpush3.bf16.msra.mxu1 %v2754_v39  ;;  %v2778_v39 = vld [vmem:[#allocation4 + $0x98] sm:$0xff]  }
 0x141   : > { %2476 = vmatprep.subr.bf16.mxu1 %v2899_v0 }
 0x144   : > { %2477 = vmatpush3.bf16.msra.mxu1 %v2755_v40  ;;  %v2779_v40 = vld [vmem:[#allocation4 + $0xa0] sm:$0xff]  }
 0x145   : > { %2478 = vmatprep.subr.bf16.mxu1 %v2899_v0 }
 0x148   : > { %2479 = vmatpush3.bf16.msra.mxu1 %v2756_v41  ;;  %v2780_v41 = vld [vmem:[#allocation4 + $0xa8] sm:$0xff]  }
 0x149   : > { %2480 = vmatprep.subr.bf16.mxu1 %v2899_v0 }
 0x14c   : > { %2481 = vmatpush3.bf16.msra.mxu1 %v2757_v52 }
 0x14d   : > { %2482 = vmatprep.subr.bf16.mxu1 %v2899_v0 }
 0x150   : > { %2483 = vmatpush3.bf16.msra.mxu1 %v2758_v53 }
 0x151   : > { %2514 = vmatprep.subr.bf16.mxu1 %v2899_v0 }
 0x206   : > { %v691_v43 = vpop.f32.mrb[0].mxu1 }
 0x207   : > { %v692_v44 = vadd.f32 %v2171_v42, %v691_v43  ;;  %v2440_v45 = vpop.f32.mrb[1].mxu1  ;;  %v2204_v42 = vld [vmem:[%s3349_s9 + $0x1] ss:$0 sm:$0xff] }
 0x208   : > { %v694_v46 = vpop.f32.mrb[2].mxu1  ;;  %v1090_v45 = vadd.f32 nan, %v2204_v42 }
 0x209   : > { %v697_v48 = vmax.f32 %v692_v44, 0.0  ;;  %v2441_v49 = vpop.f32.mrb[3].mxu1  ;;  %v2215_v44 = vld [vmem:[%s3345_s5 + $0x2] ss:$0 sm:$0xff] }
 0x20b   : > { %v698_v50 = vpack.c.bf16 %v697_v48, %v697_v48 }
 0x20d   : > { %2459 = vmatmul.mubr.bf16.vlgmr.msra.gmra.mrb[4].mxu0 %v698_v50 }
 0x20e   : > { %2463 = vmatpush3.bf16.msra.mxu0 %v822_v51  ;;  %2464 = vmatprep.mubr.msk.bf16.mxu0 %vm2900_vm0, %v2899_v0 }
 0x20f   : > { %2488 = vmatprep.subr.bf16.mxu0 %v2899_v0 }
 0x219   : > { %2465 = vmatmul.mubr.msk.bf16.vlgmr.msra.gmra.mrb[4].mxu0 %vm536_vm3, %v3085_v14 }
 0x21a   : > { %2504 = vmatprep.mubr.msk.bf16.mxu0 %vm2900_vm0, %v2899_v0  ;;  %2489 = vmatpush3.bf16.msra.mxu0 %v2759_v54 }
 0x21b   : > { %2490 = vmatprep.subr.bf16.mxu0 %v2899_v0 }
 0x21e   : > { %2491 = vmatpush3.bf16.msra.mxu0 %v2760_v55 }
 0x21f   : > { %2492 = vmatprep.subr.bf16.mxu0 %v2899_v0 }
 0x222   : > { %2493 = vmatpush3.bf16.msra.mxu0 %v2761_v56 }
 0x223   : > { %2494 = vmatprep.subr.bf16.mxu0 %v2899_v0 }
 0x226   : > { %2495 = vmatpush3.bf16.msra.mxu0 %v2762_v57  ;;  %v2781_v57 = vld [vmem:[#allocation4 + $0xb0] sm:$0xff]  }
 0x227   : > { %2496 = vmatprep.subr.bf16.mxu0 %v2899_v0 }
 0x22a   : > { %2497 = vmatpush3.bf16.msra.mxu0 %v2763_v58  ;;  %v2782_v58 = vld [vmem:[#allocation4 + $0xb8] sm:$0xff]  }
 0x22b   : > { %2498 = vmatprep.subr.bf16.mxu0 %v2899_v0 }
 0x22e   : > { %2499 = vmatpush3.bf16.msra.mxu0 %v2764_v59  ;;  %v2783_v59 = vld [vmem:[#allocation2 + $0xc0] sm:$0xff]  }
 0x22f   : > { %2500 = vmatprep.subr.bf16.mxu0 %v2899_v0 }
 0x232   : > { %2501 = vmatpush3.bf16.msra.mxu0 %v2765_v16 }
 0x233   : > { %2502 = vmatprep.subr.bf16.mxu0 %v2899_v0 }
 0x236   : > { %2503 = vmatpush3.bf16.msra.mxu0 %v2766_v17  ;;  %v2239_v17 = vld [vmem:[%s3345_s5 + $0x3] ss:$0 sm:$0xff] }
 0x237   : > { %2508 = vmatprep.subr.bf16.mxu0 %v2899_v0 }
 0x2ec   : > { %v858_v5 = vpop.f32.mrb[4].mxu0 }
 0x2ed   : > { %v859_v7 = vadd.f32 %v2191_v2, %v858_v5  ;;  %v3162_v8 = vadd.f32 %v2669_v4, %v858_v5  ;;  %v2466_v9 = vpop.f32.mrb[5].mxu0  ;;  %v2218_v2 = vld [vmem:[%s3347_s7 + $0x2] ss:$0 sm:$0xff] }
 0x2ee   : > { %v861_v10 = vpop.f32.mrb[6].mxu0 }
 0x2ef   : > { %v3164_v11 = vadd.f32 %v859_v7, %v810_v6  ;;  %v865_v12 = vmax.f32 %v3162_v8, 0.0  ;;  %v2467_v13 = vpop.f32.mrb[7].mxu0  ;;  %v1095_v48 = vadd.f32 %v3162_v8, %v1090_v45  ;;  %v2237_v7 = vld [vmem:[%s3344_s4 + $0xc] sm:$0xf] }
 0x2f0   : > { %v2790_v13 = vld [vmem:[#allocation2 + $0xf8] sm:$0xff]  }
 0x2f1   : > { %v866_v15 = vpack.c.bf16 %v865_v12, %v865_v12  ;;  %v2671_v43 = vadd.f32 %v2204_v42, %v3164_v11  ;;  %v1392_v11 = vsel %vm482_vm1, %v2237_v7, 0  ;;  %v2789_v12 = vld [vmem:[#allocation2 + $0xf0] sm:$0xff]   ;;  %v2803_v42 = vld [vmem:[#allocation2 + $0x120] sm:$0xff]  }
 0x2f2   : > { %v2811_v7 = vld [vmem:[#allocation4 + $0x120] sm:$0xff]  }
 0x2f3   : > { %2485 = vmatmul.mubr.bf16.vlgmr.msra.gmra.mrb[4].mxu1 %v866_v15  ;;  %v2672_v46 = vadd.f32 %v2671_v43, %v2215_v44  ;;  %v2228_v15 = vld [vmem:[%s3349_s9 + $0x2] ss:$0 sm:$0xff]  ;;  %v2804_v43 = vld [vmem:[#allocation2 + $0x128] sm:$0xff]  }
 0x2f4   : > { %2530 = vmatprep.mubr.msk.bf16.mxu1 %vm2900_vm0, %v2899_v0  ;;  %2515 = vmatpush3.bf16.msra.mxu1 %v2767_v18  ;;  %v1375_v18 = vadd.f32 nan, %v2228_v15 }
 0x2f5   : > { %2516 = vmatprep.subr.bf16.mxu1 %v2899_v0 }
 0x2f8   : > { %2517 = vmatpush3.bf16.msra.mxu1 %v2768_v19 }
 0x2f9   : > { %2518 = vmatprep.subr.bf16.mxu1 %v2899_v0 }
 0x2fc   : > { %2519 = vmatpush3.bf16.msra.mxu1 %v2769_v20 }
 0x2fd   : > { %2520 = vmatprep.subr.bf16.mxu1 %v2899_v0 }
 0x300   : > { %2521 = vmatpush3.bf16.msra.mxu1 %v2770_v21 }
 0x301   : > { %2522 = vmatprep.subr.bf16.mxu1 %v2899_v0 }
 0x304   : > { %2523 = vmatpush3.bf16.msra.mxu1 %v2771_v22 }
 0x305   : > { %2524 = vmatprep.subr.bf16.mxu1 %v2899_v0 }
 0x308   : > { %2525 = vmatpush3.bf16.msra.mxu1 %v2772_v23 }
 0x309   : > { %2526 = vmatprep.subr.bf16.mxu1 %v2899_v0 }
 0x30c   : > { %2527 = vmatpush3.bf16.msra.mxu1 %v2773_v34  ;;  %v2795_v34 = vld [vmem:[#allocation4 + $0xe0] sm:$0xff]  }
 0x30d   : > { %2528 = vmatprep.subr.bf16.mxu1 %v2899_v0 }
 0x310   : > { %2529 = vmatpush3.bf16.msra.mxu1 %v2774_v35  ;;  %v2796_v35 = vld [vmem:[#allocation4 + $0xe8] sm:$0xff]  }
 0x311   : > { %2560 = vmatprep.subr.bf16.mxu1 %v2899_v0 }
 0x3c6   : > { %v974_v25 = vpop.f32.mrb[4].mxu1 }
 0x3c7   : > { %v975_v26 = vadd.f32 %v2194_v24, %v974_v25  ;;  %v2486_v27 = vpop.f32.mrb[5].mxu1 }
 0x3c8   : > { %v977_v28 = vpop.f32.mrb[6].mxu1 }
 0x3c9   : > { %v980_v30 = vmax.f32 %v975_v26, 0.0  ;;  %v2487_v31 = vpop.f32.mrb[7].mxu1 }
 0x3ca   : > { %v2792_v31 = vld [vmem:[#allocation4 + $0xc8] sm:$0xff]  }
 0x3cb   : > { %v981_v32 = vpack.c.bf16 %v980_v30, %v980_v30 }
 0x3cd   : > { %2505 = vmatmul.mubr.bf16.vlgmr.msra.gmra.mrb[8].mxu0 %v981_v32  ;;  %v2793_v32 = vld [vmem:[#allocation4 + $0xd0] sm:$0xff]  }
 0x3ce   : > { %2509 = vmatpush3.bf16.msra.mxu0 %v1107_v33  ;;  %2510 = vmatprep.mubr.msk.bf16.mxu0 %vm2900_vm0, %v2899_v0  ;;  %v2794_v33 = vld [vmem:[#allocation4 + $0xd8] sm:$0xff]  }
 0x3cf   : > { %2534 = vmatprep.subr.bf16.mxu0 %v2899_v0 }
 0x3d9   : > { %2511 = vmatmul.mubr.msk.bf16.vlgmr.msra.gmra.mrb[8].mxu0 %vm536_vm3, %v3085_v14 }
 0x3da   : > { %2550 = vmatprep.mubr.msk.bf16.mxu0 %vm2900_vm0, %v2899_v0  ;;  %2535 = vmatpush3.bf16.msra.mxu0 %v2775_v36  ;;  %v2797_v36 = vld [vmem:[#allocation4 + $0xf0] sm:$0xff]  }
 0x3db   : > { %2536 = vmatprep.subr.bf16.mxu0 %v2899_v0 }
 0x3de   : > { %2537 = vmatpush3.bf16.msra.mxu0 %v2776_v37  ;;  %v2798_v37 = vld [vmem:[#allocation4 + $0xf8] sm:$0xff]  }
 0x3df   : > { %2538 = vmatprep.subr.bf16.mxu0 %v2899_v0 }
 0x3e2   : > { %2539 = vmatpush3.bf16.msra.mxu0 %v2777_v38  ;;  %v2799_v38 = vld [vmem:[#allocation2 + $0x100] sm:$0xff]  }
 0x3e3   : > { %2540 = vmatprep.subr.bf16.mxu0 %v2899_v0 }
 0x3e6   : > { %2541 = vmatpush3.bf16.msra.mxu0 %v2778_v39  ;;  %v2800_v39 = vld [vmem:[#allocation2 + $0x108] sm:$0xff]  }
 0x3e7   : > { %2542 = vmatprep.subr.bf16.mxu0 %v2899_v0 }
 0x3ea   : > { %2543 = vmatpush3.bf16.msra.mxu0 %v2779_v40  ;;  %v2801_v40 = vld [vmem:[#allocation2 + $0x110] sm:$0xff]  }
 0x3eb   : > { %2544 = vmatprep.subr.bf16.mxu0 %v2899_v0 }
 0x3ee   : > { %2545 = vmatpush3.bf16.msra.mxu0 %v2780_v41  ;;  %v2802_v41 = vld [vmem:[#allocation2 + $0x118] sm:$0xff]  }
 0x3ef   : > { %2546 = vmatprep.subr.bf16.mxu0 %v2899_v0 }
 0x3f2   : > { %2547 = vmatpush3.bf16.msra.mxu0 %v2781_v57 }
 0x3f3   : > { %2548 = vmatprep.subr.bf16.mxu0 %v2899_v0 }
 0x3f6   : > { %2549 = vmatpush3.bf16.msra.mxu0 %v2782_v58 }
 0x3f7   : > { %2554 = vmatprep.subr.bf16.mxu0 %v2899_v0 }
 0x4ac   : > { %v1143_v47 = vpop.f32.mrb[8].mxu0 }
 0x4ad   : > { %v1144_v49 = vadd.f32 %v2215_v44, %v1143_v47  ;;  %v2673_v50 = vadd.f32 %v2672_v46, %v1143_v47  ;;  %v2512_v51 = vpop.f32.mrb[9].mxu0  ;;  %v2242_v44 = vld [vmem:[%s3347_s7 + $0x3] ss:$0 sm:$0xff] }
 0x4ae   : > { %v1146_v52 = vpop.f32.mrb[10].mxu0 }
 0x4af   : > { %v1149_v53 = vadd.f32 %v1144_v49, %v1095_v48  ;;  %v1150_v54 = vmax.f32 %v2673_v50, 0.0  ;;  %v2513_v55 = vpop.f32.mrb[11].mxu0  ;;  %v1380_v21 = vadd.f32 %v2673_v50, %v1375_v18  ;;  %v2261_v49 = vld [vmem:[%s3344_s4 + $0x10] sm:$0xf]  ;;  %v2266_v18 = vld [vmem:[%s3347_s7 + $0x4] ss:$0 sm:$0xff] }
 0x4b0   : > { %v2806_v55 = vld [vmem:[#allocation2 + $0x138] sm:$0xff]  }
 0x4b1   : > { %v1151_v56 = vpack.c.bf16 %v1150_v54, %v1150_v54  ;;  %v2674_v16 = vadd.f32 %v2228_v15, %v1149_v53  ;;  %v1677_v53 = vsel %vm482_vm1, %v2261_v49, 0  ;;  %v2805_v54 = vld [vmem:[#allocation2 + $0x130] sm:$0xff]   ;;  %v2818_v15 = vld [vmem:[%s3350_s10 + $0x18] sm:$0xff]  }
 0x4b3   : > { %2531 = vmatmul.mubr.bf16.vlgmr.msra.gmra.mrb[8].mxu1 %v1151_v56  ;;  %v2675_v19 = vadd.f32 %v2674_v16, %v2239_v17  ;;  %v2252_v56 = vld [vmem:[%s3349_s9 + $0x3] ss:$0 sm:$0xff] }
 0x4b4   : > { %2576 = vmatprep.mubr.msk.bf16.mxu1 %vm2900_vm0, %v2899_v0  ;;  %2561 = vmatpush3.bf16.msra.mxu1 %v2783_v59  ;;  %v2819_v16 = vld [vmem:[%s3350_s10 + $0x20] sm:$0xff]  }
 0x4b5   : > { %2562 = vmatprep.subr.bf16.mxu1 %v2899_v0 }
 0x4b8   : > { %2563 = vmatpush3.bf16.msra.mxu1 %v2784_v60 }
 0x4b9   : > { %2564 = vmatprep.subr.bf16.mxu1 %v2899_v0 }
 0x4bc   : > { %2565 = vmatpush3.bf16.msra.mxu1 %v2785_v61 }
 0x4bd   : > { %2566 = vmatprep.subr.bf16.mxu1 %v2899_v0 }
 0x4c0   : > { %2567 = vmatpush3.bf16.msra.mxu1 %v2786_v62 }
 0x4c1   : > { %2568 = vmatprep.subr.bf16.mxu1 %v2899_v0 }
 0x4c4   : > { %2569 = vmatpush3.bf16.msra.mxu1 %v2787_v63 }
 0x4c5   : > { %2570 = vmatprep.subr.bf16.mxu1 %v2899_v0 }
 0x4c8   : > { %2571 = vmatpush3.bf16.msra.mxu1 %v2788_v1 }
 0x4c9   : > { %2572 = vmatprep.subr.bf16.mxu1 %v2899_v0 }
 0x4cc   : > { %2573 = vmatpush3.bf16.msra.mxu1 %v2789_v12  ;;  %v2816_v12 = vld [vmem:[%s3350_s10 + $0x8] sm:$0xff]  }
 0x4cd   : > { %2574 = vmatprep.subr.bf16.mxu1 %v2899_v0 }
 0x4d0   : > { %2575 = vmatpush3.bf16.msra.mxu1 %v2790_v13  ;;  %v2817_v13 = vld [vmem:[%s3350_s10 + $0x10] sm:$0xff]  }
 0x4d1   : > { %2580 = vmatprep.subr.bf16.mxu1 %v2899_v0 }
 0x586   : > { %v1259_v3 = vpop.f32.mrb[8].mxu1 }
 0x587   : > { %v1260_v4 = vadd.f32 %v2218_v2, %v1259_v3  ;;  %v2532_v5 = vpop.f32.mrb[9].mxu1  ;;  %v2807_v2 = vld [vmem:[#allocation4 + $0x100] sm:$0xff]  }
 0x588   : > { %v1262_v6 = vpop.f32.mrb[10].mxu1  ;;  %v2809_v5 = vld [vmem:[#allocation4 + $0x110] sm:$0xff]  }
 0x589   : > { %v1265_v8 = vmax.f32 %v1260_v4, 0.0  ;;  %v2533_v9 = vpop.f32.mrb[11].mxu1  ;;  %v2808_v4 = vld [vmem:[#allocation4 + $0x108] sm:$0xff]   ;;  %v2810_v6 = vld [vmem:[#allocation4 + $0x118] sm:$0xff]  }
 0x58a   : > { %v2813_v9 = vld [vmem:[#allocation4 + $0x130] sm:$0xff]  }
 0x58b   : > { %v1266_v10 = vpack.c.bf16 %v1265_v8, %v1265_v8  ;;  %v2812_v8 = vld [vmem:[#allocation4 + $0x128] sm:$0xff]  }
 0x58d   : > { %2551 = vmatmul.mubr.bf16.vlgmr.msra.gmra.mrb[12].mxu0 %v1266_v10  ;;  %v2814_v10 = vld [vmem:[#allocation4 + $0x138] sm:$0xff]  }
 0x58e   : > { %2555 = vmatpush3.bf16.msra.mxu0 %v1392_v11  ;;  %2556 = vmatprep.mubr.msk.bf16.mxu0 %vm2900_vm0, %v2899_v0  ;;  %v2815_v11 = vld [vmem:[%s3350_s10] sm:$0xff]  }
 0x58f   : > { %2606 = vmatprep.subr.bf16.mxu0 %v2899_v0 }
 0x599   : > { %2557 = vmatmul.mubr.msk.bf16.vlgmr.msra.gmra.mrb[12].mxu0 %vm536_vm3, %v3085_v14 }
 0x59a   : > { %2622 = vmatprep.mubr.msk.bf16.mxu0 %vm2900_vm0, %v2899_v0  ;;  %2607 = vmatpush3.bf16.msra.mxu0 %v2799_v38 }
 0x59b   : > { %2608 = vmatprep.subr.bf16.mxu0 %v2899_v0 }
 0x59e   : > { %2609 = vmatpush3.bf16.msra.mxu0 %v2800_v39 }
 0x59f   : > { %2610 = vmatprep.subr.bf16.mxu0 %v2899_v0 }
 0x5a2   : > { %2611 = vmatpush3.bf16.msra.mxu0 %v2801_v40 }
 0x5a3   : > { %2612 = vmatprep.subr.bf16.mxu0 %v2899_v0 }
 0x5a6   : > { %2613 = vmatpush3.bf16.msra.mxu0 %v2802_v41 }
 0x5a7   : > { %2614 = vmatprep.subr.bf16.mxu0 %v2899_v0 }
 0x5aa   : > { %2615 = vmatpush3.bf16.msra.mxu0 %v2803_v42 }
 0x5ab   : > { %2616 = vmatprep.subr.bf16.mxu0 %v2899_v0 }
 0x5ae   : > { %2617 = vmatpush3.bf16.msra.mxu0 %v2804_v43 }
 0x5af   : > { %2618 = vmatprep.subr.bf16.mxu0 %v2899_v0 }
 0x5b2   : > { %2619 = vmatpush3.bf16.msra.mxu0 %v2805_v54 }
 0x5b3   : > { %2620 = vmatprep.subr.bf16.mxu0 %v2899_v0 }
 0x5b6   : > { %2621 = vmatpush3.bf16.msra.mxu0 %v2806_v55 }
 0x5b7   : > { %2626 = vmatprep.subr.bf16.mxu0 %v2899_v0 }
 0x66c   : > { %v1428_v20 = vpop.f32.mrb[12].mxu0 }
 0x66d   : > { %v1429_v22 = vadd.f32 %v2239_v17, %v1428_v20  ;;  %v2676_v23 = vadd.f32 %v2675_v19, %v1428_v20  ;;  %v2558_v24 = vpop.f32.mrb[13].mxu0  ;;  %v2820_v17 = vld [vmem:[%s3350_s10 + $0x28] sm:$0xff]  }
 0x66e   : > { %v1431_v25 = vpop.f32.mrb[14].mxu0 }
 0x66f   : > { %v3239_v26 = vadd.f32 %v1429_v22, %v1380_v21  ;;  %v1435_v27 = vmax.f32 %v2676_v23, 0.0  ;;  %v2559_v28 = vpop.f32.mrb[15].mxu0 }
 0x670   : > { %v2276_v28 = vld [vmem:[%s3349_s9 + $0x4] ss:$0 sm:$0xff] }
 0x671   : > { %v1436_v30 = vpack.c.bf16 %v1435_v27, %v1435_v27  ;;  %v2677_v57 = vadd.f32 %v2252_v56, %v3239_v26  ;;  %v2821_v26 = vld [vmem:[%s3350_s10 + $0x30] sm:$0xff]   ;;  %v2822_v27 = vld [vmem:[%s3350_s10 + $0x38] sm:$0xff]  }
 0x673   : > { %2577 = vmatmul.mubr.bf16.vlgmr.msra.gmra.mrb[12].mxu1 %v1436_v30 }
 0x674   : > { %2581 = vmatpush3.bf16.msra.mxu1 %v2791_v29  ;;  %2596 = vmatprep.mubr.msk.bf16.mxu1 %vm2900_vm0, %v2899_v0 }
 0x675   : > { %2582 = vmatprep.subr.bf16.mxu1 %v2899_v0 }
 0x678   : > { %2583 = vmatpush3.bf16.msra.mxu1 %v2792_v31 }
 0x679   : > { %2584 = vmatprep.subr.bf16.mxu1 %v2899_v0 }
 0x67c   : > { %2585 = vmatpush3.bf16.msra.mxu1 %v2793_v32 }
 0x67d   : > { %2586 = vmatprep.subr.bf16.mxu1 %v2899_v0 }
 0x680   : > { %2587 = vmatpush3.bf16.msra.mxu1 %v2794_v33 }
 0x681   : > { %2588 = vmatprep.subr.bf16.mxu1 %v2899_v0 }
 0x684   : > { %2589 = vmatpush3.bf16.msra.mxu1 %v2795_v34 }
 0x685   : > { %2590 = vmatprep.subr.bf16.mxu1 %v2899_v0 }
 0x688   : > { %2591 = vmatpush3.bf16.msra.mxu1 %v2796_v35 }
 0x689   : > { %2592 = vmatprep.subr.bf16.mxu1 %v2899_v0 }
 0x68c   : > { %2593 = vmatpush3.bf16.msra.mxu1 %v2797_v36 }
 0x68d   : > { %2594 = vmatprep.subr.bf16.mxu1 %v2899_v0 }
 0x690   : > { %2595 = vmatpush3.bf16.msra.mxu1 %v2798_v37 }
 0x691   : > { %2600 = vmatprep.subr.bf16.mxu1 %v2899_v0 }
 0x746   : > { %v1544_v45 = vpop.f32.mrb[12].mxu1 }
 0x747   : > { %v1545_v46 = vadd.f32 %v2242_v44, %v1544_v45  ;;  %v2578_v47 = vpop.f32.mrb[13].mxu1 }
 0x748   : > { %v1547_v48 = vpop.f32.mrb[14].mxu1 }
 0x749   : > { %v1550_v50 = vmax.f32 %v1545_v46, 0.0  ;;  %v2579_v51 = vpop.f32.mrb[15].mxu1 }
 0x74b   : > { %v1551_v52 = vpack.c.bf16 %v1550_v50, %v1550_v50 }
 0x74d   : > { %2597 = vmatmul.mubr.bf16.vlgmr.msra.gmra.mrb[16].mxu1 %v1551_v52 }
 0x74e   : > { %2601 = vmatpush3.bf16.msra.mxu1 %v1677_v53  ;;  %2602 = vmatprep.mubr.msk.bf16.mxu1 %vm2900_vm0, %v2899_v0 }
 0x74f   : > { %2646 = vmatprep.subr.bf16.mxu1 %v2899_v0 }
 0x759   : > { %2603 = vmatmul.mubr.msk.bf16.vlgmr.msra.gmra.mrb[16].mxu1 %vm536_vm3, %v3085_v14  ;;  %v2263_v14 = vld [vmem:[%s3345_s5 + $0x4] ss:$0 sm:$0xff] }
 0x75a   : > { %2662 = vmatprep.mubr.msk.bf16.mxu1 %vm2900_vm0, %v2899_v0  ;;  %v2678_v58 = vadd.f32 %v2677_v57, %v2263_v14  ;;  %2647 = vmatpush3.bf16.msra.mxu1 %v2815_v11 }
 0x75b   : > { %2648 = vmatprep.subr.bf16.mxu1 %v2899_v0 }
 0x75e   : > { %2649 = vmatpush3.bf16.msra.mxu1 %v2816_v12 }
 0x75f   : > { %2650 = vmatprep.subr.bf16.mxu1 %v2899_v0 }
 0x762   : > { %2651 = vmatpush3.bf16.msra.mxu1 %v2817_v13 }
 0x763   : > { %2652 = vmatprep.subr.bf16.mxu1 %v2899_v0 }
 0x766   : > { %2653 = vmatpush3.bf16.msra.mxu1 %v2818_v15 }
 0x767   : > { %2654 = vmatprep.subr.bf16.mxu1 %v2899_v0 }
 0x76a   : > { %2655 = vmatpush3.bf16.msra.mxu1 %v2819_v16 }
 0x76b   : > { %2656 = vmatprep.subr.bf16.mxu1 %v2899_v0 }
 0x76e   : > { %2657 = vmatpush3.bf16.msra.mxu1 %v2820_v17 }
 0x76f   : > { %2658 = vmatprep.subr.bf16.mxu1 %v2899_v0 }
 0x772   : > { %2659 = vmatpush3.bf16.msra.mxu1 %v2821_v26 }
 0x773   : > { %2660 = vmatprep.subr.bf16.mxu1 %v2899_v0 }
 0x776   : > { %2661 = vmatpush3.bf16.msra.mxu1 %v2822_v27 }
 0x82c   : > { %v1713_v59 = vpop.f32.mrb[16].mxu1 }
 0x82d   : > { %v3280_v60 = vadd.f32 %v2678_v58, %v1713_v59  ;;  %v2604_v61 = vpop.f32.mrb[17].mxu1 }
 0x82e   : > { %v1716_v62 = vpop.f32.mrb[18].mxu1 }
 0x82f   : > { %v1720_v63 = vmax.f32 %v3280_v60, 0.0  ;;  %v2605_v1 = vpop.f32.mrb[19].mxu1 }
 0x831   : > { %v1721_v3 = vpack.c.bf16 %v1720_v63, %v1720_v63 }
 0x833   : > { %2623 = vmatmul.mubr.bf16.vlgmr.msra.gmra.mrb[16].mxu0 %v1721_v3 }
 0x834   : > { %2627 = vmatpush3.bf16.msra.mxu0 %v2807_v2  ;;  %2642 = vmatprep.mubr.msk.bf16.mxu0 %vm2900_vm0, %v2899_v0 }
 0x835   : > { %2628 = vmatprep.subr.bf16.mxu0 %v2899_v0 }
 0x838   : > { %2629 = vmatpush3.bf16.msra.mxu0 %v2808_v4 }
 0x839   : > { %2630 = vmatprep.subr.bf16.mxu0 %v2899_v0 }
 0x83c   : > { %2631 = vmatpush3.bf16.msra.mxu0 %v2809_v5 }
 0x83d   : > { %2632 = vmatprep.subr.bf16.mxu0 %v2899_v0 }
 0x840   : > { %2633 = vmatpush3.bf16.msra.mxu0 %v2810_v6 }
 0x841   : > { %2634 = vmatprep.subr.bf16.mxu0 %v2899_v0 }
 0x844   : > { %2635 = vmatpush3.bf16.msra.mxu0 %v2811_v7 }
 0x845   : > { %2636 = vmatprep.subr.bf16.mxu0 %v2899_v0 }
 0x848   : > { %2637 = vmatpush3.bf16.msra.mxu0 %v2812_v8 }
 0x849   : > { %2638 = vmatprep.subr.bf16.mxu0 %v2899_v0 }
 0x84c   : > { %2639 = vmatpush3.bf16.msra.mxu0 %v2813_v9 }
 0x84d   : > { %2640 = vmatprep.subr.bf16.mxu0 %v2899_v0  ;;  %v2285_v0 = vld [vmem:[%s3351_s11] ss:$0 sm:$0xff] }
 0x850   : > { %2641 = vmatpush3.bf16.msra.mxu0 %v2814_v10 }
 0x906   : > { %v1829_v19 = vpop.f32.mrb[16].mxu0 }
 0x907   : > { %v1830_v20 = vadd.f32 %v2266_v18, %v1829_v19  ;;  %v2624_v21 = vpop.f32.mrb[17].mxu0 }
 0x908   : > { %v1832_v22 = vpop.f32.mrb[18].mxu0 }
 0x909   : > { %v1835_v23 = vmax.f32 %v1830_v20, 0.0  ;;  %v2625_v24 = vpop.f32.mrb[19].mxu0 }
 0x90b   : > { %v1836_v25 = vpack.c.bf16 %v1835_v23, %v1835_v23 }
 0x90d   : > { %2643 = vmatmul.mubr.bf16.vlgmr.msra.gmra.mrb[20].mxu0 %v1836_v25 }
 0x9e0   : > { %v1944_v29 = vpop.f32.mrb[20].mxu0 }
 0x9e1   : > { %v1945_v30 = vadd.f32 %v2276_v28, %v1944_v29  ;;  %v2644_v31 = vpop.f32.mrb[21].mxu0 }
 0x9e2   : > { %v1947_v32 = vpop.f32.mrb[22].mxu0 }
 0x9e3   : > { %v1950_v33 = vadd.f32 %v3280_v60, %v1945_v30  ;;  %v2645_v34 = vpop.f32.mrb[23].mxu0 }
 0x9e5   : > { %v1951_v35 = vmax.f32 %v1950_v33, 0.0 }
 0x9e7   : > { %v1952_v36 = vpack.c.bf16 %v1951_v35, %v1951_v35 }
 0x9e9   : > { %2663 = vmatmul.mubr.bf16.vlgmr.msra.gmra.mrb[20].mxu1 %v1952_v36 }
 0xabc   : > { %v2058_v37 = vpop.f32.mrb[20].mxu1 }
 0xabd   : > { %v2059_v38 = vadd.f32 %v2285_v0, %v2058_v37  ;;  %v2664_v39 = vpop.f32.mrb[21].mxu1 }
 0xabe   : > { %v2061_v40 = vpop.f32.mrb[22].mxu1 }
 0xabf   : > { %2065 = vst.msk [vmem:[%s455_s13] sm:$0xff] %vm2064_vm4, %v2059_v38  ;;  %v2665_v41 = vpop.f32.mrb[23].mxu1 }
 0xac0 PF: > { %s24_s21 = sadd.s32 1, %s2893_s21  }
 0xac1   : > { %p21_p5 = scmp.ge.s32.totalorder %s24_s21, 10  }
 0xac3   :  { %23 = sbr.rel (!%p21_p5) target bundleno = 2 (0x2), region = 134 }
 0xaca   :  { %2085 = vsyncpa [#allocation3], 1 }
 0xacb   :  { %2087 = vsyncpa [#allocation3 + $0x1], 1 }
 0xacc   :  { %2088 = vsyncpa [#allocation5], 1 }

</bundles_post_ra>
